<compile_context>
chip_gen: v6e
topology: v6e:2x2x1
jax: 0.10.0
libtpu: 0.0.40
codegen_flags: <defaults>
</compile_context>

<pallas_src>
import jax
import jax.numpy as jnp
from jax import lax
from jax.experimental import pallas as pl
from jax.experimental.pallas import tpu as pltpu

TILE_B_MAX = 1024   # rows per grid step (cap); fits scoped VMEM on v5e/v6e/v7x
TILE_B_MIN = 128    # at least one full MXU tile of rows, lane-dense out blocks


def _choose_tile_b(batch, tile_max=TILE_B_MAX, tile_min=TILE_B_MIN):
    """Largest tile (multiple of 128, <= tile_max) that still gives >= 2 grid
    steps when the batch allows it (v7x megacore sharding)."""
    half = -(-batch // 2)                       # ceil(batch / 2)
    tile = -(-half // tile_min) * tile_min      # round up to a multiple of 128
    return int(min(tile_max, max(tile_min, tile)))


def _fused_layer(h, w_ref, shift_ref):
    # Linear with BN scale pre-folded into the bf16 weights (MXU, f32 accumulate),
    # then folded bias/BN shift + ReLU.  f32 epilogue is safe on all chips.
    # TODO(synk): on v6e/v7x a bf16 epilogue would halve VPU element ops.
    y = jnp.dot(h.astype(jnp.bfloat16), w_ref[...],
                preferred_element_type=jnp.float32)
    return jnp.maximum(y + shift_ref[...], 0.0)


def mlp_kernel(x_ref,
               w1, t1,
               w2, t2,
               w3, t3,
               w4, t4,
               w5, b5,
               out_ref):
    h = x_ref[...]                      # (tile_b, input_dim) f32
    h = _fused_layer(h, w1, t1)         # input_dim -> 512
    h = _fused_layer(h, w2, t2)         # 512 -> 256
    h = _fused_layer(h, w3, t3)         # 256 -> 128
    h = _fused_layer(h, w4, t4)         # 128 -> 64
    # Head Linear(64, 1): compute the (1, tile_b) row directly (lane-dense) as a
    # (1,64) x (tile_b,64)^T dot_general instead of a 1-lane-wide output column.
    h_b = h.astype(jnp.bfloat16)
    y_row = lax.dot_general(w5[...], h_b,
                            dimension_numbers=(((1,), (1,)), ((), ())),
                            preferred_element_type=jnp.float32)   # (1, tile_b)
    out_ref[...] = (y_row + b5[...]).astype(out_ref.dtype)


def mlp_forward(x, params, tile_b=None):
    """params: [(W'[in,out] bf16 with BN scale folded in, shift'[1,out] f32)] * 4
    hidden layers, plus (w5[1,64] bf16, b5[1,1] f32) for the head."""
    batch, input_dim = x.shape
    if tile_b is None:
        tile_b = _choose_tile_b(batch)
    num_tiles = pl.cdiv(batch, tile_b)
    padded = num_tiles * tile_b

    flat_args = [x]
    in_specs = [pl.BlockSpec((tile_b, input_dim), lambda i: (i, 0))]
    for (w, shift) in params[:-1]:
        flat_args += [w, shift]
        in_specs += [
            pl.BlockSpec(w.shape, lambda i: (0, 0)),       # VMEM-resident weight
            pl.BlockSpec(shift.shape, lambda i: (0, 0)),
        ]
    w5, b5 = params[-1]
    flat_args += [w5, b5]
    in_specs += [pl.BlockSpec(w5.shape, lambda i: (0, 0)),
                 pl.BlockSpec(b5.shape, lambda i: (0, 0))]

    out = pl.pallas_call(
        mlp_kernel,
        out_shape=jax.ShapeDtypeStruct((1, padded), jnp.float32),
        grid=(num_tiles,),
        in_specs=in_specs,
        out_specs=pl.BlockSpec((1, tile_b), lambda i: (0, i)),   # lane-dense store
        compiler_params=pltpu.CompilerParams(
            dimension_semantics=("parallel",)),
    )(*flat_args)
    return out.reshape(-1)[:batch].reshape(batch, 1)


def init_params(key, input_dim):
    """Deterministic synthetic init matching the PyTorch module's shapes.
    BatchNorm1d initialized like PyTorch (gamma=1, beta=0, mean=0, var=1,
    eps=1e-5); BN scale is folded into the weights and the Linear bias + BN shift
    into a single per-feature shift."""
    dims = [input_dim, 512, 256, 128, 64, 1]
    eps = 1e-5
    params = []
    keys = jax.random.split(key, len(dims) - 1)
    for i in range(len(dims) - 1):
        fan_in, fan_out = dims[i], dims[i + 1]
        kw, kb = jax.random.split(keys[i])
        bound = 1.0 / jnp.sqrt(fan_in)
        # Stored already transposed: [in, out]
        w = jax.random.uniform(kw, (fan_in, fan_out), jnp.float32, -bound, bound)
        b = jax.random.uniform(kb, (1, fan_out), jnp.float32, -bound, bound)
        if i < len(dims) - 2:
            gamma = jnp.ones((1, fan_out), jnp.float32)
            beta = jnp.zeros((1, fan_out), jnp.float32)
            running_mean = jnp.zeros((1, fan_out), jnp.float32)
            running_var = jnp.ones((1, fan_out), jnp.float32)
            scale = gamma / jnp.sqrt(running_var + eps)
            shift = beta - running_mean * scale
            w_folded = (w * scale).astype(jnp.bfloat16)     # fold BN scale into W
            shift_folded = b * scale + shift                # fold Linear bias in
            params.append((w_folded, shift_folded))
        else:
            # Head stored as a (1, 64) bf16 row (MXU operand) + f32 bias.
            params.append((w.reshape(1, fan_in).astype(jnp.bfloat16),
                           b.reshape(1, 1)))
    return params


def reference_forward(x, params):
    """Pure-JAX reference with identical numerics (bf16 operands, f32 accum)."""
    h = x.astype(jnp.float32)
    for (w, shift) in params[:-1]:
        y = jnp.dot(h.astype(jnp.bfloat16), w,
                    preferred_element_type=jnp.float32)
        h = jnp.maximum(y + shift, 0.0)
    w5, b5 = params[-1]
    return jnp.dot(h.astype(jnp.bfloat16), w5.T,
                   preferred_element_type=jnp.float32) + b5


if __name__ == "__main__":
    key = jax.random.PRNGKey(0)
    k_x, k_p = jax.random.split(key)

    batch, input_dim = 200, 32    # non-multiple of the tile -> ragged final block
    x = jax.random.normal(k_x, (batch, input_dim), jnp.float32)
    params = init_params(k_p, input_dim)

    out = mlp_forward(x, params)
    out = jax.block_until_ready(out)

    ref = reference_forward(x, params)
    assert out.shape == (batch, 1), out.shape
    assert jnp.allclose(out, ref, atol=2e-3, rtol=2e-3), (
        float(jnp.max(jnp.abs(out - ref))))

    print("KERNEL_OK")
</pallas_src>

<mosaic_0001>
module attributes {stable_mosaic.version = 11 : i64} {
  func.func @mlp_kernel(%arg0: i32, %arg1: memref<128x32xf32, #tpu.memory_space<vmem>>, %arg2: memref<32x512xbf16, #tpu.memory_space<vmem>>, %arg3: memref<1x512xf32, #tpu.memory_space<vmem>>, %arg4: memref<512x256xbf16, #tpu.memory_space<vmem>>, %arg5: memref<1x256xf32, #tpu.memory_space<vmem>>, %arg6: memref<256x128xbf16, #tpu.memory_space<vmem>>, %arg7: memref<1x128xf32, #tpu.memory_space<vmem>>, %arg8: memref<128x64xbf16, #tpu.memory_space<vmem>>, %arg9: memref<1x64xf32, #tpu.memory_space<vmem>>, %arg10: memref<1x64xbf16, #tpu.memory_space<vmem>>, %arg11: memref<1x1xf32, #tpu.memory_space<vmem>>, %arg12: memref<1x128xf32, #tpu.memory_space<vmem>>) attributes {dimension_semantics = [#tpu.dimension_semantics<parallel>], iteration_bounds = array<i64: 2>, scalar_prefetch = 0 : i64, scratch_operands = 0 : i64, tpu.core_type = #tpu.core_type<tc>, window_params = [{transform_indices = @transform_0, window_bounds = array<i64: 128, 32>}, {pipeline_mode = #tpu.pipeline_mode<synchronous>, transform_indices = @transform_1, window_bounds = array<i64: 32, 512>}, {pipeline_mode = #tpu.pipeline_mode<synchronous>, transform_indices = @transform_2, window_bounds = array<i64: 1, 512>}, {pipeline_mode = #tpu.pipeline_mode<synchronous>, transform_indices = @transform_3, window_bounds = array<i64: 512, 256>}, {pipeline_mode = #tpu.pipeline_mode<synchronous>, transform_indices = @transform_4, window_bounds = array<i64: 1, 256>}, {pipeline_mode = #tpu.pipeline_mode<synchronous>, transform_indices = @transform_5, window_bounds = array<i64: 256, 128>}, {pipeline_mode = #tpu.pipeline_mode<synchronous>, transform_indices = @transform_6, window_bounds = array<i64: 1, 128>}, {pipeline_mode = #tpu.pipeline_mode<synchronous>, transform_indices = @transform_7, window_bounds = array<i64: 128, 64>}, {pipeline_mode = #tpu.pipeline_mode<synchronous>, transform_indices = @transform_8, window_bounds = array<i64: 1, 64>}, {pipeline_mode = #tpu.pipeline_mode<synchronous>, transform_indices = @transform_9, window_bounds = array<i64: 1, 64>}, {pipeline_mode = #tpu.pipeline_mode<synchronous>, transform_indices = @transform_10, window_bounds = array<i64: 1, 1>}, {transform_indices = @transform_11, window_bounds = array<i64: 1, 128>}]} {
    %c0 = arith.constant 0 : index
    %c0_0 = arith.constant 0 : index
    %0 = vector.load %arg1[%c0, %c0_0] : memref<128x32xf32, #tpu.memory_space<vmem>>, vector<128x32xf32>
    %1 = arith.truncf %0 : vector<128x32xf32> to vector<128x32xbf16>
    %c0_1 = arith.constant 0 : index
    %c0_2 = arith.constant 0 : index
    %2 = vector.load %arg2[%c0_1, %c0_2] : memref<32x512xbf16, #tpu.memory_space<vmem>>, vector<32x512xbf16>
    %cst = arith.constant dense<0.000000e+00> : vector<128x512xf32>
    %3 = tpu.matmul %1, %2, %cst {dimension_numbers = #tpu.dot_dimension_numbers<[1], [0], [0], [1], [0, 0, 1, 1], [], []>} : vector<128x32xbf16>, vector<32x512xbf16>, vector<128x512xf32> -> vector<128x512xf32>
    %c0_3 = arith.constant 0 : index
    %c0_4 = arith.constant 0 : index
    %4 = vector.load %arg3[%c0_3, %c0_4] : memref<1x512xf32, #tpu.memory_space<vmem>>, vector<1x512xf32>
    %5 = vector.broadcast %4 : vector<1x512xf32> to vector<128x512xf32>
    %6 = arith.addf %3, %5 : vector<128x512xf32>
    %cst_5 = arith.constant 0.000000e+00 : f32
    %7 = vector.broadcast %cst_5 : f32 to vector<128x512xf32>
    %8 = arith.maximumf %6, %7 : vector<128x512xf32>
    %9 = arith.truncf %8 : vector<128x512xf32> to vector<128x512xbf16>
    %c0_6 = arith.constant 0 : index
    %c0_7 = arith.constant 0 : index
    %10 = vector.load %arg4[%c0_6, %c0_7] : memref<512x256xbf16, #tpu.memory_space<vmem>>, vector<512x256xbf16>
    %cst_8 = arith.constant dense<0.000000e+00> : vector<128x256xf32>
    %11 = tpu.matmul %9, %10, %cst_8 {dimension_numbers = #tpu.dot_dimension_numbers<[1], [0], [0], [1], [0, 0, 1, 1], [], []>} : vector<128x512xbf16>, vector<512x256xbf16>, vector<128x256xf32> -> vector<128x256xf32>
    %c0_9 = arith.constant 0 : index
    %c0_10 = arith.constant 0 : index
    %12 = vector.load %arg5[%c0_9, %c0_10] : memref<1x256xf32, #tpu.memory_space<vmem>>, vector<1x256xf32>
    %13 = vector.broadcast %12 : vector<1x256xf32> to vector<128x256xf32>
    %14 = arith.addf %11, %13 : vector<128x256xf32>
    %cst_11 = arith.constant 0.000000e+00 : f32
    %15 = vector.broadcast %cst_11 : f32 to vector<128x256xf32>
    %16 = arith.maximumf %14, %15 : vector<128x256xf32>
    %17 = arith.truncf %16 : vector<128x256xf32> to vector<128x256xbf16>
    %c0_12 = arith.constant 0 : index
    %c0_13 = arith.constant 0 : index
    %18 = vector.load %arg6[%c0_12, %c0_13] : memref<256x128xbf16, #tpu.memory_space<vmem>>, vector<256x128xbf16>
    %cst_14 = arith.constant dense<0.000000e+00> : vector<128x128xf32>
    %19 = tpu.matmul %17, %18, %cst_14 {dimension_numbers = #tpu.dot_dimension_numbers<[1], [0], [0], [1], [0, 0, 1, 1], [], []>} : vector<128x256xbf16>, vector<256x128xbf16>, vector<128x128xf32> -> vector<128x128xf32>
    %c0_15 = arith.constant 0 : index
    %c0_16 = arith.constant 0 : index
    %20 = vector.load %arg7[%c0_15, %c0_16] : memref<1x128xf32, #tpu.memory_space<vmem>>, vector<1x128xf32>
    %21 = vector.broadcast %20 : vector<1x128xf32> to vector<128x128xf32>
    %22 = arith.addf %19, %21 : vector<128x128xf32>
    %cst_17 = arith.constant 0.000000e+00 : f32
    %23 = vector.broadcast %cst_17 : f32 to vector<128x128xf32>
    %24 = arith.maximumf %22, %23 : vector<128x128xf32>
    %25 = arith.truncf %24 : vector<128x128xf32> to vector<128x128xbf16>
    %c0_18 = arith.constant 0 : index
    %c0_19 = arith.constant 0 : index
    %26 = vector.load %arg8[%c0_18, %c0_19] : memref<128x64xbf16, #tpu.memory_space<vmem>>, vector<128x64xbf16>
    %cst_20 = arith.constant dense<0.000000e+00> : vector<128x64xf32>
    %27 = tpu.matmul %25, %26, %cst_20 {dimension_numbers = #tpu.dot_dimension_numbers<[1], [0], [0], [1], [0, 0, 1, 1], [], []>} : vector<128x128xbf16>, vector<128x64xbf16>, vector<128x64xf32> -> vector<128x64xf32>
    %c0_21 = arith.constant 0 : index
    %c0_22 = arith.constant 0 : index
    %28 = vector.load %arg9[%c0_21, %c0_22] : memref<1x64xf32, #tpu.memory_space<vmem>>, vector<1x64xf32>
    %29 = vector.broadcast %28 : vector<1x64xf32> to vector<128x64xf32>
    %30 = arith.addf %27, %29 : vector<128x64xf32>
    %cst_23 = arith.constant 0.000000e+00 : f32
    %31 = vector.broadcast %cst_23 : f32 to vector<128x64xf32>
    %32 = arith.maximumf %30, %31 : vector<128x64xf32>
    %33 = arith.truncf %32 : vector<128x64xf32> to vector<128x64xbf16>
    %c0_24 = arith.constant 0 : index
    %c0_25 = arith.constant 0 : index
    %34 = vector.load %arg10[%c0_24, %c0_25] : memref<1x64xbf16, #tpu.memory_space<vmem>>, vector<1x64xbf16>
    %cst_26 = arith.constant dense<0.000000e+00> : vector<1x128xf32>
    %35 = tpu.matmul %34, %33, %cst_26 {dimension_numbers = #tpu.dot_dimension_numbers<[1], [1], [0], [0], [0, 0, 1, 0], [], []>} : vector<1x64xbf16>, vector<128x64xbf16>, vector<1x128xf32> -> vector<1x128xf32>
    %c0_27 = arith.constant 0 : index
    %c0_28 = arith.constant 0 : index
    %36 = vector.load %arg11[%c0_27, %c0_28] : memref<1x1xf32, #tpu.memory_space<vmem>>, vector<1x1xf32>
    %37 = vector.broadcast %36 : vector<1x1xf32> to vector<1x128xf32>
    %38 = arith.addf %35, %37 : vector<1x128xf32>
    %c0_29 = arith.constant 0 : index
    %c0_30 = arith.constant 0 : index
    %39 = vector.load %arg12[%c0_29, %c0_30] : memref<1x128xf32, #tpu.memory_space<vmem>>, vector<1x128xf32>
    tpu.vector_store %arg12[%c0_29, %c0_30], %38 {strides = array<i32>} : memref<1x128xf32, #tpu.memory_space<vmem>>, vector<1x128xf32>,
    return
  }
  func.func @transform_0(%arg0: i32) -> (i32, i32) {
    %c0_i32 = arith.constant 0 : i32
    %c0_i32_0 = arith.constant 0 : i32
    return %arg0, %c0_i32 : i32, i32
  }
  func.func @transform_1(%arg0: i32) -> (i32, i32) {
    %c0_i32 = arith.constant 0 : i32
    %c0_i32_0 = arith.constant 0 : i32
    %c0_i32_1 = arith.constant 0 : i32
    return %c0_i32, %c0_i32_0 : i32, i32
  }
  func.func @transform_2(%arg0: i32) -> (i32, i32) {
    %c0_i32 = arith.constant 0 : i32
    %c0_i32_0 = arith.constant 0 : i32
    %c0_i32_1 = arith.constant 0 : i32
    return %c0_i32, %c0_i32_0 : i32, i32
  }
  func.func @transform_3(%arg0: i32) -> (i32, i32) {
    %c0_i32 = arith.constant 0 : i32
    %c0_i32_0 = arith.constant 0 : i32
    %c0_i32_1 = arith.constant 0 : i32
    return %c0_i32, %c0_i32_0 : i32, i32
  }
  func.func @transform_4(%arg0: i32) -> (i32, i32) {
    %c0_i32 = arith.constant 0 : i32
    %c0_i32_0 = arith.constant 0 : i32
    %c0_i32_1 = arith.constant 0 : i32
    return %c0_i32, %c0_i32_0 : i32, i32
  }
  func.func @transform_5(%arg0: i32) -> (i32, i32) {
    %c0_i32 = arith.constant 0 : i32
    %c0_i32_0 = arith.constant 0 : i32
    %c0_i32_1 = arith.constant 0 : i32
    return %c0_i32, %c0_i32_0 : i32, i32
  }
  func.func @transform_6(%arg0: i32) -> (i32, i32) {
    %c0_i32 = arith.constant 0 : i32
    %c0_i32_0 = arith.constant 0 : i32
    %c0_i32_1 = arith.constant 0 : i32
    return %c0_i32, %c0_i32_0 : i32, i32
  }
  func.func @transform_7(%arg0: i32) -> (i32, i32) {
    %c0_i32 = arith.constant 0 : i32
    %c0_i32_0 = arith.constant 0 : i32
    %c0_i32_1 = arith.constant 0 : i32
    return %c0_i32, %c0_i32_0 : i32, i32
  }
  func.func @transform_8(%arg0: i32) -> (i32, i32) {
    %c0_i32 = arith.constant 0 : i32
    %c0_i32_0 = arith.constant 0 : i32
    %c0_i32_1 = arith.constant 0 : i32
    return %c0_i32, %c0_i32_0 : i32, i32
  }
  func.func @transform_9(%arg0: i32) -> (i32, i32) {
    %c0_i32 = arith.constant 0 : i32
    %c0_i32_0 = arith.constant 0 : i32
    %c0_i32_1 = arith.constant 0 : i32
    return %c0_i32, %c0_i32_0 : i32, i32
  }
  func.func @transform_10(%arg0: i32) -> (i32, i32) {
    %c0_i32 = arith.constant 0 : i32
    %c0_i32_0 = arith.constant 0 : i32
    %c0_i32_1 = arith.constant 0 : i32
    return %c0_i32, %c0_i32_0 : i32, i32
  }
  func.func @transform_11(%arg0: i32) -> (i32, i32) {
    %c0_i32 = arith.constant 0 : i32
    %c0_i32_0 = arith.constant 0 : i32
    return %c0_i32, %arg0 : i32, i32
  }
}

</mosaic_0001>

<bundles_post_ra>
// kernel: tpu_custom_call.1
= control target key start
LH: loop header
LB: loop body
LE: loop exit
PB: predicated region body
PF: predicated region fallthrough
CT: control target
= control target key end

     0   :  { %s3225_s0 = inlined_call_operand.vmem [shape: f32[200,32], index: 0, kind: input, shape index: {}]   ;;  %s3226_s1 = inlined_call_operand.vmem [shape: bf16[32,512], index: 1, kind: input, shape index: {}]   ;;  %s3227_s2 = inlined_call_operand.vmem [shape: f32[1,512], index: 2, kind: input, shape index: {}]   ;;  %s3228_s3 = inlined_call_operand.hbm [shape: bf16[512,256], index: 3, kind: input, shape index: {}]   ;;  %s3229_s4 = inlined_call_operand.vmem [shape: f32[1,256], index: 4, kind: input, shape index: {}]   ;;  %s3230_s5 = inlined_call_operand.vmem [shape: bf16[256,128], index: 5, kind: input, shape index: {}]   ;;  %s3231_s6 = inlined_call_operand.vmem [shape: f32[1,128], index: 6, kind: input, shape index: {}]   ;;  %s3232_s7 = inlined_call_operand.vmem [shape: bf16[128,64], index: 7, kind: input, shape index: {}]   ;;  %s3233_s8 = inlined_call_operand.vmem [shape: f32[1,64], index: 8, kind: input, shape index: {}]   ;;  %s3234_s9 = inlined_call_operand.vmem [shape: bf16[1,64], index: 9, kind: input, shape index: {}]   ;;  %s3235_s10 = inlined_call_operand.<no memory space> [shape: f32[1,1], index: 10, kind: input, shape index: {}]   ;;  %s3236_s11 = inlined_call_operand.hbm [shape: f32[1,256], index: 11, kind: output, shape index: {}]  }
   0x1   :  { %3237 = sst [smem:[#allocation9_spill]] %s3228_s3  ;;  %v16_v0 = vstv %s3235_s10 }
   0x2   :  { %17 = vst [vmem:[#allocation2] sm:$0x1] %v16_v0 }
   0x3   :  { %18 = vsyncpa [#allocation4], 0 }
   0x4   :  { %19 = vsyncpa [#allocation5], 0 }
   0x5   :  { %21 = vsyncpa [#allocation5 + $0x1], 0  ;;  %s2760_s19 = smov 0   ;;  %s2762_s20 = smov 0  }
   0x6   :  { %s2764_s21 = smov 0   ;;  %s2766_s22 = smov 0  }
   0x7 LB: > { %s2781_s10 = sadd.s32 4294967295, %s2688_s22   ;;  %s2143_s23 = sadd.s32 4294967294, %s2688_s22   ;;  %s2688_s22 = sphi %s2766_s22, %s3246_s22   ;;  %s2684_s21 = sphi %s2764_s21, %s3245_s21   ;;  %s2680_s20 = sphi %s2762_s20, %s3244_s20   ;;  %s2676_s19 = sphi %s2760_s19, %s3243_s19  }
   0x8   : > { %s2785_s24 = sadd.s32 1, %s2688_s22   ;;  %s270_s25 = sadd.s32 1, %s2684_s21 }
   0x9   : > { %s267_s26 = ssub.s32 %s2688_s22, %s2785_s24  ;;  %p280_p0 = scmp.ne.s32.totalorder %s2684_s21, %s2680_s20 }
   0xa   : > { %p268_p1 = scmp.eq.s32.totalorder %s267_s26, 0  ;;  %p281_p2 = scmp.eq.s32.totalorder %s2781_s10, 1 }
   0xb   : > { %p286_p3 = scmp.ne.s32.totalorder %s2680_s20, %s2676_s19  ;;  %p287_p4 = scmp.eq.s32.totalorder %s2143_s23, 1 }
   0xc   : > { %s2796_s27 = scalar_select %p268_p1, %s2684_s21, %s270_s25  }
   0xd   : > { %p2798_p5 = por %p281_p2, %p280_p0  ;;  %p2802_p6 = por %p287_p4, %p286_p3 }
   0xe   : > { %p2144_p7 = scmp.ge.s32.totalorder %s2688_s22, 1  ;;  %p294_p8 = scmp.lt.s32.totalorder %s2688_s22, 3 }
   0xf   : > { %s3239_s29 = scalar_select %p2802_p6, 1, 0 }
  0x10   : > { %p2424_p9 = scmp.eq.s32.totalorder %s2781_s10, 0  ;;  %p2809_p10 = pnand %p2144_p7, %p294_p8 }
  0x11   : > { %s2690_s12 = smov [#allocation3]  }
  0x12   : > { %s312_s13 = sshll.u32 %s2690_s12, 4  ;;  %p2416_p11 = pneg %p2809_p10  ;;  %s313_s13 = int_to_ptr.vmem [resolvable:$true] %s312_s13 }
  0x13   : > { %s2609_s14 = scalar_lea.vmem %s313_s13, 8192  ;;  %p2617_p3 = scmp.lt.s32.totalorder %s313_s13, %s313_s13 }
  0x14   : > { %p2417_p12 = pnand %p2424_p9, %p2416_p11  ;;  %p2610_p0 = scmp.ne.s32.totalorder %s313_s13, %s2609_s14 }
  0x15   : > { %p2618_p4 = scmp.lt.s32.totalorder %s2609_s14, %s2609_s14 }
  0x16   : > { %p2600_p13 = pneg %p2417_p12 }
  0x17   : > { %p2619_p6 = por %p2618_p4, %p2617_p3 }
  0x18   : > { %p2612_p1 = pnand %p2610_p0, %p2600_p13 }
  0x1a   : > { %p2613_p2 = pneg %p2612_p1 }
  0x1c   : > { %p2620_p7 = pnand %p2619_p6, %p2613_p2 }
  0x1e   : > { %2623 = shalt.err (!%p2620_p7)
}
  0x1f   : > { %s2691_s15 = smov 128   ;;  %s2692_s16 = smov 8  }
  0x20   : > { %s3241_s3 = sld [smem:[#allocation9_spill]] }
  0x22   : > { %366 = sbr.rel (%p2809_p10) target bundleno = 1203 (0x4b3), region = 64 }
  0x26   : > { %2419 = dma.hbm_to_vmem [thread:$0]  (!%p2417_p12), %s3241_s3, 8192, %s313_s13, [#allocation4], %s2691_s15, %s2691_s15, %s2692_s16  }
  0x27   : > { %2667 = dma.done.wait (%p2424_p9), [#allocation4], 8192  }
  0x28   : > { %2669 = vsyncadd (%p2424_p9), [#allocation4], 4294959104  ;;  %s2827_s23 = sshll.u32 %s2781_s10, 4  ;;  %v2693_v1 = vmov 0   ;;  %v2466_v2 = vld [vmem:[%s3226_s1 + $0x24] ss:$16 sps:$4 sm:$0xff]  }
  0x29   : > { %575 = vmatprep.mubr.bf16.mxu0 %v2693_v1  ;;  %688 = vmatprep.mubr.bf16.mxu1 %v2693_v1  ;;  %p414_p6 = scmp.lt.s32.totalorder %s2827_s23, 24  ;;  %v2468_v3 = vld [vmem:[%s3226_s1 + $0x2c] ss:$16 sps:$4 sm:$0xff]   ;;  %v2470_v4 = vld [vmem:[%s3226_s1 + $0x20] ss:$16 sps:$4 sm:$0xff]   ;;  %vm518_vm0 = vcmask 261120  }
  0x2a   : > { %2465 = vset.pattern.permute.xlu0 %v2693_v1  ;;  %555 = vmatprep.subr.bf16.mxu0 %v2466_v2  ;;  %v2471_v5 = vld [vmem:[%s3226_s1 + $0x28] ss:$16 sps:$4 sm:$0xff]   ;;  %v2472_v6 = vld [vmem:[%s3226_s1 + $0x4] ss:$16 sps:$4 sm:$0xff]   ;;  %v2474_v7 = vld [vmem:[%s3226_s1 + $0xc] ss:$16 sps:$4 sm:$0xff]  }
  0x2b   : > { %s415_s25 = scalar_select %p414_p6, %s2827_s23, 24  ;;  %668 = vmatprep.subr.bf16.mxu1 %v2468_v3  ;;  %556 = vmatpush1.bf16.msra.mxu0 %v2470_v4  ;;  %v2476_v8 = vld [vmem:[%s3226_s1] ss:$16 sps:$4 sm:$0xff]   ;;  %v2477_v9 = vld [vmem:[%s3226_s1 + $0x8] ss:$16 sps:$4 sm:$0xff]   ;;  %vm2695_vm1 = vmmov 0  }
  0x2c   : > { %669 = vmatpush1.bf16.msra.mxu1 %v2471_v5  ;;  %557 = vmatprep.subr.bf16.mxu0 %v2472_v6  ;;  %v2478_v15 = vld [vmem:[#allocation3 + $0x70] ss:$8 sps:$4 sm:$0xff]   ;;  %v2480_v16 = vld [vmem:[#allocation3 + $0x74] ss:$8 sps:$4 sm:$0xff]   ;;  %v2484_v19 = vld [vmem:[#allocation3 + $0x60] ss:$8 sps:$4 sm:$0xff]  }
  0x2d   : > { %s2150_s26 = sshll.u32 %s415_s25, 3  ;;  %670 = vmatprep.subr.bf16.mxu1 %v2474_v7  ;;  %v2481_v17 = vld [vmem:[#allocation3 + $0x170] ss:$8 sps:$4 sm:$0xff]   ;;  %v2483_v18 = vld [vmem:[#allocation3 + $0x174] ss:$8 sps:$4 sm:$0xff]   ;;  %vm1994_vm2 = vcmask 523264  }
  0x2e   : > { %s2849_s25 = scalar_lea.vmem %s3225_s0, %s2150_s26  ;;  %v2486_v20 = vld [vmem:[#allocation3 + $0x64] ss:$8 sps:$4 sm:$0xff]   ;;  %v2487_v23 = vld [vmem:[#allocation3 + $0x160] ss:$8 sps:$4 sm:$0xff]   ;;  %v2492_v24 = vld [vmem:[#allocation3 + $0x54] ss:$8 sps:$4 sm:$0xff]  }
  0x2f   : > { %v424_v10 = vld [vmem:[%s2849_s25] sm:$0xff]  ;;  %v425_v11 = vld [vmem:[%s2849_s25 + $0x8] sm:$0xff]  ;;  %558 = vmatpush1.bf16.msra.mxu0 %v2476_v8  ;;  %v426_v13 = vld [vmem:[%s2849_s25 + $0x10] sm:$0xff]  ;;  %s407_s3 = sand.u32 1, %s2680_s20   ;;  %s2696_s13 = smov [#allocation6]  }
  0x30   : > { %v440_v12 = vpack.c.bf16 %v425_v11, %v424_v10  ;;  %671 = vmatpush1.bf16.msra.mxu1 %v2477_v9  ;;  %v427_v14 = vld [vmem:[%s2849_s25 + $0x18] sm:$0xff]  ;;  %1261 = vmatprep.subr.bf16.mxu0 %v2480_v16  ;;  %v2489_v22 = vld [vmem:[#allocation3 + $0x164] ss:$8 sps:$4 sm:$0xff]   ;;  %v2496_v31 = vld [vmem:[#allocation3 + $0x40] ss:$8 sps:$4 sm:$0xff]   ;;  %s408_s26 = scalar_lea.vmem [#allocation6], %s407_s3 }
  0x31   : > { %v441_v21 = vpack.c.bf16 %v427_v14, %v426_v13  ;;  %1374 = vmatprep.subr.bf16.mxu1 %v2483_v18  ;;  %v2490_v25 = vld [vmem:[#allocation3 + $0x50] ss:$8 sps:$4 sm:$0xff]   ;;  %v2495_v26 = vld [vmem:[#allocation3 + $0x154] ss:$8 sps:$4 sm:$0xff]   ;;  %v2498_v28 = vld [vmem:[#allocation3 + $0x44] ss:$8 sps:$4 sm:$0xff]  }
  0x32   : > { %2159 = vmatmul.mubr.msk.bf16.vlgmr.msra.gmra.mxu0 %vm518_vm0, %v440_v12  ;;  %v428_v27 = vld [vmem:[%s2849_s25 + $0x20] sm:$0xff]  ;;  %v429_v29 = vld [vmem:[%s2849_s25 + $0x28] sm:$0xff]  ;;  %v2493_v30 = vld [vmem:[#allocation3 + $0x150] ss:$8 sps:$4 sm:$0xff]   ;;  %s2076_s16 = sshll.u32 %s408_s26, 4  ;;  %s2064_s30 = scalar_lea.sflag [#allocation5], %s407_s3  ;;  %s3186_s16 = int_to_ptr.vmem [resolvable:$true] %s2076_s16 }
  0x33   : > { %2167 = vmatmul.mubr.msk.bf16.vlgmr.msra.gmra.mxu1 %vm518_vm0, %v440_v12  ;;  %585 = vmatprep.mubr.bf16.mxu0 %v2693_v1  ;;  %v2501_v32 = vld [vmem:[#allocation3 + $0x144] ss:$8 sps:$4 sm:$0xff]   ;;  %v442_v33 = vpack.c.bf16 %v429_v29, %v428_v27  ;;  %v2499_v34 = vld [vmem:[#allocation3 + $0x140] ss:$8 sps:$4 sm:$0xff]   ;;  %v2504_v35 = vld [vmem:[#allocation3 + $0x34] ss:$8 sps:$4 sm:$0xff]  }
  0x34   : > { %698 = vmatprep.mubr.bf16.mxu1 %v2693_v1  ;;  %1262 = vmatpush1.bf16.msra.mxu0 %v2478_v15  ;;  %v2502_v36 = vld [vmem:[#allocation3 + $0x30] ss:$8 sps:$4 sm:$0xff]   ;;  %v2507_v37 = vld [vmem:[#allocation3 + $0x134] ss:$8 sps:$4 sm:$0xff]   ;;  %v2510_v39 = vld [vmem:[#allocation3 + $0x24] ss:$8 sps:$4 sm:$0xff]  }
  0x35   : > { %1375 = vmatpush1.bf16.msra.mxu1 %v2481_v17  ;;  %1263 = vmatprep.subr.bf16.mxu0 %v2486_v20  ;;  %v430_v38 = vld [vmem:[%s2849_s25 + $0x30] sm:$0xff]  ;;  %v431_v40 = vld [vmem:[%s2849_s25 + $0x38] sm:$0xff]  ;;  %v2508_v42 = vld [vmem:[#allocation3 + $0x20] ss:$8 sps:$4 sm:$0xff]   ;;  %s2624_s12 = scalar_lea.vmem %s3186_s16, 16  ;;  %s2628_s14 = sshll.u32 %s2696_s13, 4  ;;  %s2629_s14 = int_to_ptr.vmem [resolvable:$false] %s2628_s14 }
  0x36   : > { %1376 = vmatprep.subr.bf16.mxu1 %v2489_v22  ;;  %v2505_v41 = vld [vmem:[#allocation3 + $0x130] ss:$8 sps:$4 sm:$0xff]   ;;  %v2513_v43 = vld [vmem:[#allocation3 + $0x124] ss:$8 sps:$4 sm:$0xff]   ;;  %v443_v44 = vpack.c.bf16 %v431_v40, %v430_v38  ;;  %v2511_v45 = vld [vmem:[#allocation3 + $0x120] ss:$8 sps:$4 sm:$0xff]   ;;  %p2625_p8 = scmp.ne.s32.totalorder %s3186_s16, %s2624_s12  ;;  %p2631_p11 = scmp.lt.s32.totalorder %s3186_s16, %s2629_s14 }
  0x37   : > { %v2516_v46 = vld [vmem:[#allocation3 + $0x14] ss:$8 sps:$4 sm:$0xff]   ;;  %v2514_v47 = vld [vmem:[#allocation3 + $0x10] ss:$8 sps:$4 sm:$0xff]   ;;  %v2522_v50 = vld [vmem:[#allocation3 + $0x4] ss:$8 sps:$4 sm:$0xff]  }
  0x38   : > { %1264 = vmatpush1.bf16.msra.mxu0 %v2484_v19  ;;  %v2519_v48 = vld [vmem:[#allocation3 + $0x114] ss:$8 sps:$4 sm:$0xff]   ;;  %v433_v51 = vld [vmem:[%s2849_s25 + $0x48] sm:$0xff]  ;;  %v2517_v52 = vld [vmem:[#allocation3 + $0x110] ss:$8 sps:$4 sm:$0xff]   ;;  %p2626_p9 = pnand %p2625_p8, %p2798_p5  ;;  %s2630_s10 = scalar_lea.vmem %s2629_s14, 32 }
  0x39   : > { %1377 = vmatpush1.bf16.msra.mxu1 %v2487_v23  ;;  %1265 = vmatprep.subr.bf16.mxu0 %v2492_v24  ;;  %v432_v49 = vld [vmem:[%s2849_s25 + $0x40] sm:$0xff]  ;;  %v434_v58 = vld [vmem:[%s2849_s25 + $0x50] sm:$0xff]  ;;  %v435_v61 = vld [vmem:[%s2849_s25 + $0x58] sm:$0xff]  ;;  %p2632_p12 = scmp.lt.s32.totalorder %s2630_s10, %s2624_s12 }
  0x3a   : > { %2160 = vmatmul.mubr.msk.bf16.gmra.mxu0 %vm518_vm0, %v441_v21  ;;  %1378 = vmatprep.subr.bf16.mxu1 %v2495_v26  ;;  %v2520_v53 = vld [vmem:[#allocation3] ss:$8 sps:$4 sm:$0xff]   ;;  %v2525_v54 = vld [vmem:[#allocation3 + $0x104] ss:$8 sps:$4 sm:$0xff]   ;;  %v444_v55 = vpack.c.bf16 %v433_v51, %v432_v49  ;;  %v2528_v57 = vld [vmem:[#allocation3 + $0xf4] ss:$8 sps:$4 sm:$0xff]   ;;  %v445_v3 = vpack.c.bf16 %v435_v61, %v434_v58  ;;  %p2627_p10 = pneg %p2626_p9 }
  0x3b   : > { %2168 = vmatmul.mubr.msk.bf16.gmra.mxu1 %vm518_vm0, %v441_v21  ;;  %595 = vmatprep.mubr.bf16.mxu0 %v2693_v1  ;;  %v2523_v56 = vld [vmem:[#allocation3 + $0x100] ss:$8 sps:$4 sm:$0xff]   ;;  %v2526_v59 = vld [vmem:[#allocation3 + $0xf0] ss:$8 sps:$4 sm:$0xff]   ;;  %v2531_v60 = vld [vmem:[#allocation3 + $0x1f4] ss:$8 sps:$4 sm:$0xff]   ;;  %p2633_p13 = por %p2632_p12, %p2631_p11 }
  0x3c   : > { %708 = vmatprep.mubr.bf16.mxu1 %v2693_v1  ;;  %1266 = vmatpush1.bf16.msra.mxu0 %v2490_v25  ;;  %v2534_v62 = vld [vmem:[#allocation3 + $0xe4] ss:$8 sps:$4 sm:$0xff]   ;;  %v2529_v63 = vld [vmem:[#allocation3 + $0x1f0] ss:$8 sps:$4 sm:$0xff]   ;;  %v2532_v0 = vld [vmem:[#allocation3 + $0xe0] ss:$8 sps:$4 sm:$0xff]  }
  0x3d   : > { %1267 = vmatprep.subr.bf16.mxu0 %v2498_v28  ;;  %1379 = vmatpush1.bf16.msra.mxu1 %v2493_v30  ;;  %v2537_v2 = vld [vmem:[#allocation3 + $0x1e4] ss:$8 sps:$4 sm:$0xff]   ;;  %v2535_v4 = vld [vmem:[#allocation3 + $0x1e0] ss:$8 sps:$4 sm:$0xff]   ;;  %v2540_v5 = vld [vmem:[#allocation3 + $0xd4] ss:$8 sps:$4 sm:$0xff]   ;;  %p2634_p0 = pnand %p2633_p13, %p2627_p10 }
  0x3e   : > { %1380 = vmatprep.subr.bf16.mxu1 %v2501_v32  ;;  %v2538_v6 = vld [vmem:[#allocation3 + $0xd0] ss:$8 sps:$4 sm:$0xff]   ;;  %v2543_v7 = vld [vmem:[#allocation3 + $0x1d4] ss:$8 sps:$4 sm:$0xff]   ;;  %v2546_v8 = vld [vmem:[#allocation3 + $0xc4] ss:$8 sps:$4 sm:$0xff]  }
  0x3f   : > { %v436_v9 = vld [vmem:[%s2849_s25 + $0x60] sm:$0xff]  ;;  %v437_v10 = vld [vmem:[%s2849_s25 + $0x68] sm:$0xff]  ;;  %v2541_v11 = vld [vmem:[#allocation3 + $0x1d0] ss:$8 sps:$4 sm:$0xff]  }
  0x40   : > { %1268 = vmatpush1.bf16.msra.mxu0 %v2496_v31  ;;  %v2544_v12 = vld [vmem:[#allocation3 + $0xc0] ss:$8 sps:$4 sm:$0xff]   ;;  %v2549_v13 = vld [vmem:[#allocation3 + $0x1c4] ss:$8 sps:$4 sm:$0xff]   ;;  %v446_v14 = vpack.c.bf16 %v437_v10, %v436_v9  ;;  %v2552_v16 = vld [vmem:[#allocation3 + $0xb4] ss:$8 sps:$4 sm:$0xff]  }
  0x41   : > { %1381 = vmatpush1.bf16.msra.mxu1 %v2499_v34  ;;  %1269 = vmatprep.subr.bf16.mxu0 %v2504_v35  ;;  %v2547_v15 = vld [vmem:[#allocation3 + $0x1c0] ss:$8 sps:$4 sm:$0xff]   ;;  %v2550_v17 = vld [vmem:[#allocation3 + $0xb0] ss:$8 sps:$4 sm:$0xff]   ;;  %v2555_v18 = vld [vmem:[#allocation3 + $0x1b4] ss:$8 sps:$4 sm:$0xff]   ;;  %v458_v35 = vlaneseq }
  0x42   : > { %2161 = vmatmul.mubr.msk.bf16.gmra.mxu0 %vm518_vm0, %v442_v33  ;;  %1382 = vmatprep.subr.bf16.mxu1 %v2507_v37  ;;  %v438_v19 = vld [vmem:[%s2849_s25 + $0x70] sm:$0xff]  ;;  %v439_v20 = vld [vmem:[%s2849_s25 + $0x78] sm:$0xff]  ;;  %v2556_v25 = vld [vmem:[#allocation3 + $0xa0] ss:$8 sps:$4 sm:$0xff]   ;;  %s3184_s25 = scalar_lea.hbm %s3236_s11, %s2827_s23 }
  0x43   : > { %2169 = vmatmul.mubr.msk.bf16.gmra.mxu1 %vm518_vm0, %v442_v33  ;;  %605 = vmatprep.mubr.bf16.mxu0 %v2693_v1  ;;  %v2553_v21 = vld [vmem:[#allocation3 + $0x1b0] ss:$8 sps:$4 sm:$0xff]   ;;  %v447_v22 = vpack.c.bf16 %v439_v20, %v438_v19  ;;  %v2558_v23 = vld [vmem:[#allocation3 + $0xa4] ss:$8 sps:$4 sm:$0xff]   ;;  %v2559_v26 = vld [vmem:[#allocation3 + $0x1a0] ss:$8 sps:$4 sm:$0xff]  }
  0x44   : > { %718 = vmatprep.mubr.bf16.mxu1 %v2693_v1  ;;  %1270 = vmatpush1.bf16.msra.mxu0 %v2502_v36  ;;  %v2561_v24 = vld [vmem:[#allocation3 + $0x1a4] ss:$8 sps:$4 sm:$0xff]   ;;  %v2564_v27 = vld [vmem:[#allocation3 + $0x94] ss:$8 sps:$4 sm:$0xff]   ;;  %v2562_v28 = vld [vmem:[#allocation3 + $0x90] ss:$8 sps:$4 sm:$0xff]  }
  0x45   : > { %1271 = vmatprep.subr.bf16.mxu0 %v2510_v39  ;;  %1383 = vmatpush1.bf16.msra.mxu1 %v2505_v41  ;;  %v2565_v29 = vld [vmem:[#allocation3 + $0x190] ss:$8 sps:$4 sm:$0xff]   ;;  %v2570_v30 = vld [vmem:[#allocation3 + $0x84] ss:$8 sps:$4 sm:$0xff]   ;;  %v2568_v32 = vld [vmem:[#allocation3 + $0x80] ss:$8 sps:$4 sm:$0xff]  }
  0x46   : > { %1384 = vmatprep.subr.bf16.mxu1 %v2513_v43  ;;  %v2573_v31 = vld [vmem:[#allocation3 + $0x184] ss:$8 sps:$4 sm:$0xff]   ;;  %v2571_v33 = vld [vmem:[#allocation3 + $0x180] ss:$8 sps:$4 sm:$0xff]   ;;  %v2574_v34 = vld [vmem:[%s3230_s5 + $0x78] sm:$0xff]   ;;  %v2912_v36 = vshrl.u32 %v458_v35, 7 }
  0x47   : > { %v456_v41 = vld [vmem:[%s3227_s2] sm:$0xf]  ;;  %v2576_v19 = vld [vmem:[%s3230_s5 + $0x70] sm:$0xff]  }
  0x48   : > { %1272 = vmatpush1.bf16.msra.mxu0 %v2508_v42  ;;  %v464_v37 = vsub.s32 1, %v2912_v36  ;;  %v472_v38 = vsub.s32 3, %v2912_v36  ;;  %v2917_v39 = vsub.s32 0, %v2912_v36  ;;  %v468_v40 = vsub.s32 2, %v2912_v36 }
  0x49   : > { %1385 = vmatpush1.bf16.msra.mxu1 %v2511_v45  ;;  %1273 = vmatprep.subr.bf16.mxu0 %v2516_v46 }
  0x4a   : > { %2162 = vmatmul.mubr.msk.bf16.gmra.mxu0 %vm518_vm0, %v443_v44  ;;  %1386 = vmatprep.subr.bf16.mxu1 %v2519_v48  ;;  %v2927_v45 = vrot.slane %v456_v41, %v472_v38  ;;  %v2930_v46 = vrot.slane %v456_v41, %v2917_v39 }
  0x4b   : > { %2170 = vmatmul.mubr.msk.bf16.gmra.mxu1 %vm518_vm0, %v443_v44  ;;  %615 = vmatprep.mubr.bf16.mxu0 %v2693_v1  ;;  %v2925_v44 = vrot.slane %v456_v41, %v464_v37 }
  0x4c   : > { %728 = vmatprep.mubr.bf16.mxu1 %v2693_v1  ;;  %1274 = vmatpush1.bf16.msra.mxu0 %v2514_v47  ;;  %v2932_v47 = vrot.slane %v456_v41, %v468_v40 }
  0x4d   : > { %1275 = vmatprep.subr.bf16.mxu0 %v2522_v50  ;;  %1387 = vmatpush1.bf16.msra.mxu1 %v2517_v52 }
  0x4e   : > { %1388 = vmatprep.subr.bf16.mxu1 %v2525_v54 }
  0x50   : > { %1276 = vmatpush1.bf16.msra.mxu0 %v2520_v53 }
  0x51   : > { %1389 = vmatpush1.bf16.msra.mxu1 %v2523_v56  ;;  %1277 = vmatprep.subr.bf16.mxu0 %v2528_v57 }
  0x52   : > { %2163 = vmatmul.mubr.msk.bf16.gmra.mxu0 %vm518_vm0, %v444_v55  ;;  %1390 = vmatprep.subr.bf16.mxu1 %v2531_v60 }
  0x53   : > { %2171 = vmatmul.mubr.msk.bf16.gmra.mxu1 %vm518_vm0, %v444_v55  ;;  %625 = vmatprep.mubr.bf16.mxu0 %v2693_v1 }
  0x54   : > { %738 = vmatprep.mubr.bf16.mxu1 %v2693_v1  ;;  %1278 = vmatpush2.bf16.msra.mxu0 %v2526_v59 }
  0x55   : > { %1279 = vmatprep.subr.bf16.mxu0 %v2534_v62  ;;  %1391 = vmatpush2.bf16.msra.mxu1 %v2529_v63 }
  0x56   : > { %1392 = vmatprep.subr.bf16.mxu1 %v2537_v2 }
  0x58   : > { %1280 = vmatpush2.bf16.msra.mxu0 %v2532_v0 }
  0x59   : > { %1393 = vmatpush2.bf16.msra.mxu1 %v2535_v4  ;;  %1281 = vmatprep.subr.bf16.mxu0 %v2540_v5 }
  0x5a   : > { %2164 = vmatmul.mubr.msk.bf16.gmra.mxu0 %vm518_vm0, %v445_v3  ;;  %1394 = vmatprep.subr.bf16.mxu1 %v2543_v7 }
  0x5b   : > { %2172 = vmatmul.mubr.msk.bf16.gmra.mxu1 %vm518_vm0, %v445_v3  ;;  %635 = vmatprep.mubr.bf16.mxu0 %v2693_v1 }
  0x5c   : > { %748 = vmatprep.mubr.bf16.mxu1 %v2693_v1  ;;  %1282 = vmatpush2.bf16.msra.mxu0 %v2538_v6 }
  0x5d   : > { %1283 = vmatprep.subr.bf16.mxu0 %v2546_v8  ;;  %1395 = vmatpush2.bf16.msra.mxu1 %v2541_v11 }
  0x5e   : > { %1396 = vmatprep.subr.bf16.mxu1 %v2549_v13  ;;  %v2575_v13 = vld [vmem:[%s3230_s5 + $0x38] sm:$0xff]  }
  0x60   : > { %1284 = vmatpush2.bf16.msra.mxu0 %v2544_v12 }
  0x61   : > { %1397 = vmatpush2.bf16.msra.mxu1 %v2547_v15  ;;  %1285 = vmatprep.subr.bf16.mxu0 %v2552_v16 }
  0x62   : > { %2165 = vmatmul.mubr.msk.bf16.gmra.mxu0 %vm518_vm0, %v446_v14  ;;  %1398 = vmatprep.subr.bf16.mxu1 %v2555_v18 }
  0x63   : > { %2173 = vmatmul.mubr.msk.bf16.gmra.mxu1 %vm518_vm0, %v446_v14  ;;  %645 = vmatprep.mubr.bf16.mxu0 %v2693_v1 }
  0x64   : > { %758 = vmatprep.mubr.bf16.mxu1 %v2693_v1  ;;  %1286 = vmatpush2.bf16.msra.mxu0 %v2550_v17  ;;  %v2567_v1 = vld [vmem:[#allocation3 + $0x194] ss:$8 sps:$4 sm:$0xff]  }
  0x65   : > { %1399 = vmatpush2.bf16.msra.mxu1 %v2553_v21  ;;  %1287 = vmatprep.subr.bf16.mxu0 %v2558_v23 }
  0x66   : > { %1400 = vmatprep.subr.bf16.mxu1 %v2561_v24 }
  0x68   : > { %1288 = vmatpush2.bf16.msra.mxu0 %v2556_v25 }
  0x69   : > { %1401 = vmatpush2.bf16.msra.mxu1 %v2559_v26  ;;  %1289 = vmatprep.subr.bf16.mxu0 %v2564_v27 }
  0x6a   : > { %2166 = vmatmul.mubr.msk.bf16.gmra.mxu0 %vm518_vm0, %v447_v22  ;;  %1402 = vmatprep.subr.bf16.mxu1 %v2567_v1 }
  0x6b   : > { %2174 = vmatmul.mubr.msk.bf16.gmra.mxu1 %vm518_vm0, %v447_v22 }
  0x6c   : > { %1290 = vmatpush2.bf16.msra.mxu0 %v2562_v28  ;;  %v2577_v28 = vld [vmem:[%s3230_s5 + $0x30] sm:$0xff]  }
  0x6d   : > { %1403 = vmatpush2.bf16.msra.mxu1 %v2565_v29  ;;  %1291 = vmatprep.subr.bf16.mxu0 %v2570_v30 }
  0x6e   : > { %1404 = vmatprep.subr.bf16.mxu1 %v2573_v31 }
  0x70   : > { %1292 = vmatpush2.bf16.msra.mxu0 %v2568_v32 }
  0x71   : > { %1405 = vmatpush2.bf16.msra.mxu1 %v2571_v33  ;;  %2269 = vmatprep.subr.bf16.mxu0 %v2574_v34  ;;  %v2578_v33 = vld [vmem:[%s3230_s5 + $0x68] sm:$0xff]  }
  0xf2   : > { %v577_v42 = vpop.f32.mrf.mxu0 }
  0xf3   : > { %v690_v43 = vpop.f32.mrf.mxu1  ;;  %v578_v56 = vadd.f32 %v577_v42, %v2930_v46 }
  0xf4   : > { %v579_v48 = vpop.f32.mrf.mxu0  ;;  %v691_v57 = vadd.f32 %v690_v43, %v2932_v47 }
  0xf5   : > { %v692_v49 = vpop.f32.mrf.mxu1  ;;  %v580_v52 = vadd.f32 %v579_v48, %v2925_v44  ;;  %v769_v7 = vmax.f32 %v578_v56, 0.0 }
  0xf6   : > { %v581_v50 = vpop.f32.mrf.mxu0  ;;  %v693_v53 = vadd.f32 %v692_v49, %v2927_v45  ;;  %v771_v8 = vmax.f32 %v691_v57, 0.0  ;;  %v2580_v57 = vld [vmem:[%s3230_s5 + $0x60] sm:$0xff]  }
  0xf7   : > { %v694_v51 = vpop.f32.mrf.mxu1  ;;  %v582_v54 = vadd.f32 %v581_v50, %v2930_v46  ;;  %v770_v3 = vmax.f32 %v580_v52, 0.0 }
  0xf8   : > { %v695_v55 = vadd.f32 %v694_v51, %v2932_v47  ;;  %v583_v58 = vpop.f32.mrf.mxu0  ;;  %v772_v4 = vmax.f32 %v693_v53, 0.0  ;;  %v2579_v51 = vld [vmem:[%s3230_s5 + $0x28] sm:$0xff]  }
  0xf9   : > { %v696_v59 = vpop.f32.mrf.mxu1  ;;  %v584_v60 = vadd.f32 %v583_v58, %v2925_v44  ;;  %v773_v62 = vmax.f32 %v582_v54, 0.0 }
  0xfa   : > { %v697_v61 = vadd.f32 %v696_v59, %v2927_v45  ;;  %v775_v63 = vmax.f32 %v695_v55, 0.0  ;;  %v587_v0 = vpop.f32.mrf.mxu0 }
  0xfb   : > { %v700_v2 = vpop.f32.mrf.mxu1  ;;  %v774_v5 = vmax.f32 %v584_v60, 0.0  ;;  %v833_v14 = vpack.c.bf16 %v773_v62, %v769_v7  ;;  %v588_v23 = vadd.f32 %v587_v0, %v2930_v46 }
  0xfc   : > { %v776_v6 = vmax.f32 %v697_v61, 0.0  ;;  %v589_v9 = vpop.f32.mrf.mxu0  ;;  %v835_v15 = vpack.c.bf16 %v775_v63, %v771_v8  ;;  %v701_v24 = vadd.f32 %v700_v2, %v2932_v47 }
  0xfd   : > { %v702_v10 = vpop.f32.mrf.mxu1  ;;  %v834_v11 = vpack.c.bf16 %v774_v5, %v770_v3  ;;  %v590_v16 = vadd.f32 %v589_v9, %v2925_v44  ;;  %v777_v41 = vmax.f32 %v588_v23, 0.0  ;;  %v2582_v9 = vld [vmem:[%s3230_s5 + $0x58] sm:$0xff]  }
  0xfe   : > { %v836_v12 = vpack.c.bf16 %v776_v6, %v772_v4  ;;  %v591_v17 = vpop.f32.mrf.mxu0  ;;  %v703_v20 = vadd.f32 %v702_v10, %v2927_v45  ;;  %v779_v42 = vmax.f32 %v701_v24, 0.0  ;;  %v2581_v4 = vld [vmem:[%s3230_s5 + $0x20] sm:$0xff]  }
  0xff   : > { %v704_v18 = vpop.f32.mrf.mxu1  ;;  %v592_v21 = vadd.f32 %v591_v17, %v2930_v46  ;;  %1293 = vmatprep.mubr.bf16.mxu0 %v834_v11  ;;  %v778_v34 = vmax.f32 %v590_v16, 0.0 }
 0x100   : > { %v705_v22 = vadd.f32 %v704_v18, %v2932_v47  ;;  %1406 = vmatprep.mubr.bf16.mxu1 %v836_v12  ;;  %v593_v25 = vpop.f32.mrf.mxu0  ;;  %1294 = vmatmul.mubr.bf16.vlgmr.msra.gmra.mxu0 %v833_v14  ;;  %v780_v35 = vmax.f32 %v703_v20, 0.0  ;;  %v2583_v20 = vld [vmem:[%s3230_s5 + $0x18] sm:$0xff]  }
 0x101   : > { %v706_v26 = vpop.f32.mrf.mxu1  ;;  %1407 = vmatmul.mubr.bf16.vlgmr.msra.gmra.mxu1 %v835_v15  ;;  %v594_v27 = vadd.f32 %v593_v25, %v2925_v44  ;;  %2270 = vmatpush3.bf16.msra.mxu0 %v2575_v13  ;;  %v781_v29 = vmax.f32 %v592_v21, 0.0 }
 0x102   : > { %v707_v1 = vadd.f32 %v706_v26, %v2927_v45  ;;  %v783_v30 = vmax.f32 %v705_v22, 0.0  ;;  %v597_v31 = vpop.f32.mrf.mxu0  ;;  %2271 = vmatprep.subr.bf16.mxu0 %v2576_v19  ;;  %v2584_v26 = vld [vmem:[%s3230_s5 + $0x50] sm:$0xff]  }
 0x103   : > { %v710_v32 = vpop.f32.mrf.mxu1  ;;  %v782_v38 = vmax.f32 %v594_v27, 0.0  ;;  %v837_v52 = vpack.c.bf16 %v781_v29, %v777_v41  ;;  %v598_v61 = vadd.f32 %v597_v31, %v2930_v46 }
 0x104   : > { %v784_v40 = vmax.f32 %v707_v1, 0.0  ;;  %v599_v43 = vpop.f32.mrf.mxu0  ;;  %v839_v53 = vpack.c.bf16 %v783_v30, %v779_v42  ;;  %v711_v62 = vadd.f32 %v710_v32, %v2932_v47 }
 0x105   : > { %v712_v48 = vpop.f32.mrf.mxu1  ;;  %v838_v49 = vpack.c.bf16 %v782_v38, %v778_v34  ;;  %2272 = vmatpush3.bf16.msra.mxu0 %v2577_v28  ;;  %v600_v54 = vadd.f32 %v599_v43, %v2925_v44  ;;  %v785_v14 = vmax.f32 %v598_v61, 0.0 }
 0x106   : > { %v840_v50 = vpack.c.bf16 %v784_v40, %v780_v35  ;;  %v601_v55 = vpop.f32.mrf.mxu0  ;;  %2273 = vmatprep.subr.bf16.mxu0 %v2578_v33  ;;  %v713_v58 = vadd.f32 %v712_v48, %v2927_v45  ;;  %v787_v15 = vmax.f32 %v711_v62, 0.0  ;;  %v2585_v35 = vld [vmem:[%s3230_s5 + $0x10] sm:$0xff]  }
 0x107   : > { %v714_v56 = vpop.f32.mrf.mxu1  ;;  %v602_v59 = vadd.f32 %v601_v55, %v2930_v46  ;;  %1303 = vmatprep.mubr.bf16.mxu0 %v838_v49  ;;  %v786_v10 = vmax.f32 %v600_v54, 0.0 }
 0x108   : > { %v715_v60 = vadd.f32 %v714_v56, %v2932_v47  ;;  %1416 = vmatprep.mubr.bf16.mxu1 %v840_v50  ;;  %v603_v63 = vpop.f32.mrf.mxu0  ;;  %1304 = vmatmul.mubr.bf16.gmra.mxu0 %v837_v52  ;;  %v788_v11 = vmax.f32 %v713_v58, 0.0 }
 0x109   : > { %v716_v0 = vpop.f32.mrf.mxu1  ;;  %1417 = vmatmul.mubr.bf16.gmra.mxu1 %v839_v53  ;;  %v604_v2 = vadd.f32 %v603_v63, %v2925_v44  ;;  %2274 = vmatpush3.bf16.msra.mxu0 %v2579_v51  ;;  %v789_v5 = vmax.f32 %v602_v59, 0.0 }
 0x10a   : > { %v717_v3 = vadd.f32 %v716_v0, %v2927_v45  ;;  %v791_v6 = vmax.f32 %v715_v60, 0.0  ;;  %v607_v7 = vpop.f32.mrf.mxu0  ;;  %2275 = vmatprep.subr.bf16.mxu0 %v2580_v57 }
 0x10b   : > { %v720_v8 = vpop.f32.mrf.mxu1  ;;  %v790_v12 = vmax.f32 %v604_v2, 0.0  ;;  %v841_v21 = vpack.c.bf16 %v789_v5, %v785_v14  ;;  %v608_v29 = vadd.f32 %v607_v7, %v2930_v46 }
 0x10c   : > { %v792_v13 = vmax.f32 %v717_v3, 0.0  ;;  %v609_v16 = vpop.f32.mrf.mxu0  ;;  %v843_v22 = vpack.c.bf16 %v791_v6, %v787_v15  ;;  %v721_v30 = vadd.f32 %v720_v8, %v2932_v47 }
 0x10d   : > { %v722_v17 = vpop.f32.mrf.mxu1  ;;  %v842_v18 = vpack.c.bf16 %v790_v12, %v786_v10  ;;  %2276 = vmatpush3.bf16.msra.mxu0 %v2581_v4  ;;  %v610_v23 = vadd.f32 %v609_v16, %v2925_v44  ;;  %v793_v51 = vmax.f32 %v608_v29, 0.0 }
 0x10e   : > { %v844_v19 = vpack.c.bf16 %v792_v13, %v788_v11  ;;  %v611_v24 = vpop.f32.mrf.mxu0  ;;  %2277 = vmatprep.subr.bf16.mxu0 %v2582_v9  ;;  %v723_v27 = vadd.f32 %v722_v17, %v2927_v45  ;;  %v795_v52 = vmax.f32 %v721_v30, 0.0 }
 0x10f   : > { %v724_v25 = vpop.f32.mrf.mxu1  ;;  %v612_v1 = vadd.f32 %v611_v24, %v2930_v46  ;;  %1313 = vmatprep.mubr.bf16.mxu0 %v842_v18  ;;  %v794_v43 = vmax.f32 %v610_v23, 0.0 }
 0x110   : > { %v725_v28 = vadd.f32 %v724_v25, %v2932_v47  ;;  %1426 = vmatprep.mubr.bf16.mxu1 %v844_v19  ;;  %v613_v31 = vpop.f32.mrf.mxu0  ;;  %1314 = vmatmul.mubr.bf16.gmra.mxu0 %v841_v21  ;;  %v796_v48 = vmax.f32 %v723_v27, 0.0 }
 0x111   : > { %v726_v32 = vpop.f32.mrf.mxu1  ;;  %1427 = vmatmul.mubr.bf16.gmra.mxu1 %v843_v22  ;;  %v614_v33 = vadd.f32 %v613_v31, %v2925_v44  ;;  %2278 = vmatpush3.bf16.msra.mxu0 %v2583_v20  ;;  %v797_v38 = vmax.f32 %v612_v1, 0.0 }
 0x112   : > { %v727_v34 = vadd.f32 %v726_v32, %v2927_v45  ;;  %v799_v40 = vmax.f32 %v725_v28, 0.0  ;;  %v617_v41 = vpop.f32.mrf.mxu0  ;;  %2279 = vmatprep.subr.bf16.mxu0 %v2584_v26 }
 0x113   : > { %v730_v42 = vpop.f32.mrf.mxu1  ;;  %v798_v49 = vmax.f32 %v614_v33, 0.0  ;;  %v845_v57 = vpack.c.bf16 %v797_v38, %v793_v51  ;;  %v618_v2 = vadd.f32 %v617_v41, %v2930_v46 }
 0x114   : > { %v800_v50 = vmax.f32 %v727_v34, 0.0  ;;  %v619_v53 = vpop.f32.mrf.mxu0  ;;  %v847_v58 = vpack.c.bf16 %v799_v40, %v795_v52  ;;  %v731_v3 = vadd.f32 %v730_v42, %v2932_v47 }
 0x115   : > { %v732_v54 = vpop.f32.mrf.mxu1  ;;  %v846_v55 = vpack.c.bf16 %v798_v49, %v794_v43  ;;  %2280 = vmatpush3.bf16.msra.mxu0 %v2585_v35  ;;  %v620_v59 = vadd.f32 %v619_v53, %v2925_v44  ;;  %v801_v16 = vmax.f32 %v618_v2, 0.0 }
 0x116   : > { %v848_v56 = vpack.c.bf16 %v800_v50, %v796_v48  ;;  %v621_v60 = vpop.f32.mrf.mxu0  ;;  %v733_v62 = vadd.f32 %v732_v54, %v2927_v45  ;;  %v803_v17 = vmax.f32 %v731_v3, 0.0 }
 0x117   : > { %v734_v61 = vpop.f32.mrf.mxu1  ;;  %v622_v63 = vadd.f32 %v621_v60, %v2930_v46  ;;  %1323 = vmatprep.mubr.bf16.mxu0 %v846_v55  ;;  %v802_v12 = vmax.f32 %v620_v59, 0.0 }
 0x118   : > { %v735_v0 = vadd.f32 %v734_v61, %v2932_v47  ;;  %1436 = vmatprep.mubr.bf16.mxu1 %v848_v56  ;;  %v623_v4 = vpop.f32.mrf.mxu0  ;;  %1324 = vmatmul.mubr.bf16.gmra.mxu0 %v845_v57  ;;  %v804_v13 = vmax.f32 %v733_v62, 0.0 }
 0x119   : > { %v736_v5 = vpop.f32.mrf.mxu1  ;;  %1437 = vmatmul.mubr.bf16.gmra.mxu1 %v847_v58  ;;  %v624_v6 = vadd.f32 %v623_v4, %v2925_v44  ;;  %v805_v8 = vmax.f32 %v622_v63, 0.0 }
 0x11a   : > { %v737_v7 = vadd.f32 %v736_v5, %v2927_v45  ;;  %v807_v9 = vmax.f32 %v735_v0, 0.0  ;;  %v627_v10 = vpop.f32.mrf.mxu0 }
 0x11b   : > { %v740_v11 = vpop.f32.mrf.mxu1  ;;  %v806_v14 = vmax.f32 %v624_v6, 0.0  ;;  %v849_v22 = vpack.c.bf16 %v805_v8, %v801_v16  ;;  %v628_v29 = vadd.f32 %v627_v10, %v2930_v46 }
 0x11c   : > { %v808_v15 = vmax.f32 %v737_v7, 0.0  ;;  %v629_v18 = vpop.f32.mrf.mxu0  ;;  %v851_v23 = vpack.c.bf16 %v807_v9, %v803_v17  ;;  %v741_v30 = vadd.f32 %v740_v11, %v2932_v47 }
 0x11d   : > { %v742_v19 = vpop.f32.mrf.mxu1  ;;  %v850_v20 = vpack.c.bf16 %v806_v14, %v802_v12  ;;  %v630_v24 = vadd.f32 %v629_v18, %v2925_v44  ;;  %v809_v50 = vmax.f32 %v628_v29, 0.0 }
 0x11e   : > { %v852_v21 = vpack.c.bf16 %v808_v15, %v804_v13  ;;  %v631_v25 = vpop.f32.mrf.mxu0  ;;  %v743_v27 = vadd.f32 %v742_v19, %v2927_v45  ;;  %v811_v51 = vmax.f32 %v741_v30, 0.0 }
 0x11f   : > { %v744_v26 = vpop.f32.mrf.mxu1  ;;  %v632_v1 = vadd.f32 %v631_v25, %v2930_v46  ;;  %1333 = vmatprep.mubr.bf16.mxu0 %v850_v20  ;;  %v810_v42 = vmax.f32 %v630_v24, 0.0 }
 0x120   : > { %v745_v28 = vadd.f32 %v744_v26, %v2932_v47  ;;  %1446 = vmatprep.mubr.bf16.mxu1 %v852_v21  ;;  %v633_v31 = vpop.f32.mrf.mxu0  ;;  %1334 = vmatmul.mubr.bf16.gmra.mxu0 %v849_v22  ;;  %v812_v43 = vmax.f32 %v743_v27, 0.0 }
 0x121   : > { %v746_v32 = vpop.f32.mrf.mxu1  ;;  %1447 = vmatmul.mubr.bf16.gmra.mxu1 %v851_v23  ;;  %v634_v33 = vadd.f32 %v633_v31, %v2925_v44  ;;  %v813_v35 = vmax.f32 %v632_v1, 0.0 }
 0x122   : > { %v747_v34 = vadd.f32 %v746_v32, %v2927_v45  ;;  %v815_v38 = vmax.f32 %v745_v28, 0.0  ;;  %v637_v40 = vpop.f32.mrf.mxu0 }
 0x123   : > { %v750_v41 = vpop.f32.mrf.mxu1  ;;  %v814_v48 = vmax.f32 %v634_v33, 0.0  ;;  %v853_v56 = vpack.c.bf16 %v813_v35, %v809_v50  ;;  %v638_v0 = vadd.f32 %v637_v40, %v2930_v46 }
 0x124   : > { %v816_v49 = vmax.f32 %v747_v34, 0.0  ;;  %v639_v52 = vpop.f32.mrf.mxu0  ;;  %v855_v57 = vpack.c.bf16 %v815_v38, %v811_v51  ;;  %v751_v2 = vadd.f32 %v750_v41, %v2932_v47  ;;  %v2588_v51 = vld [vmem:[%s3230_s5 + $0x40] sm:$0xff]  }
 0x125   : > { %v752_v53 = vpop.f32.mrf.mxu1  ;;  %v854_v54 = vpack.c.bf16 %v814_v48, %v810_v42  ;;  %v640_v58 = vadd.f32 %v639_v52, %v2925_v44  ;;  %v817_v15 = vmax.f32 %v638_v0, 0.0  ;;  %v2589_v52 = vld [vmem:[%s3230_s5] sm:$0xff]  }
 0x126   : > { %v856_v55 = vpack.c.bf16 %v816_v49, %v812_v43  ;;  %v641_v59 = vpop.f32.mrf.mxu0  ;;  %v753_v61 = vadd.f32 %v752_v53, %v2927_v45  ;;  %v819_v16 = vmax.f32 %v751_v2, 0.0  ;;  %v2590_v53 = vld [vmem:[%s3232_s7 + $0x38] sm:$0xff]  }
 0x127   : > { %v754_v60 = vpop.f32.mrf.mxu1  ;;  %v642_v62 = vadd.f32 %v641_v59, %v2930_v46  ;;  %1343 = vmatprep.mubr.bf16.mxu0 %v854_v54  ;;  %v818_v11 = vmax.f32 %v640_v58, 0.0  ;;  %v2591_v54 = vld [vmem:[%s3232_s7 + $0x30] sm:$0xff]   ;;  %2358 = vmatprep.subr.bf16.mxu1 %v2590_v53 }
 0x128   : > { %v755_v63 = vadd.f32 %v754_v60, %v2932_v47  ;;  %1456 = vmatprep.mubr.bf16.mxu1 %v856_v55  ;;  %v643_v3 = vpop.f32.mrf.mxu0  ;;  %1344 = vmatmul.mubr.bf16.gmra.mxu0 %v853_v56  ;;  %v820_v12 = vmax.f32 %v753_v61, 0.0  ;;  %v2592_v55 = vld [vmem:[%s3232_s7 + $0x28] sm:$0xff]   ;;  %v929_v56 = vld [vmem:[%s3229_s4] sm:$0x3] }
 0x129   : > { %v756_v4 = vpop.f32.mrf.mxu1  ;;  %1457 = vmatmul.mubr.bf16.gmra.mxu1 %v855_v57  ;;  %v644_v5 = vadd.f32 %v643_v3, %v2925_v44  ;;  %v821_v7 = vmax.f32 %v642_v62, 0.0  ;;  %v3057_v57 = vrot.slane %v929_v56, %v464_v37  ;;  %v3060_v58 = vrot.slane %v929_v56, %v2917_v39 }
 0x12a   : > { %v757_v6 = vadd.f32 %v756_v4, %v2927_v45  ;;  %v823_v8 = vmax.f32 %v755_v63, 0.0  ;;  %v647_v9 = vpop.f32.mrf.mxu0  ;;  %2359 = vmatpush3.bf16.msra.mxu1 %v2590_v53 }
 0x12b   : > { %v760_v10 = vpop.f32.mrf.mxu1  ;;  %v822_v13 = vmax.f32 %v644_v5, 0.0  ;;  %v857_v21 = vpack.c.bf16 %v821_v7, %v817_v15  ;;  %v648_v28 = vadd.f32 %v647_v9, %v2930_v46  ;;  %2360 = vmatprep.subr.bf16.mxu1 %v2591_v54 }
 0x12c   : > { %v824_v14 = vmax.f32 %v757_v6, 0.0  ;;  %v649_v17 = vpop.f32.mrf.mxu0  ;;  %v859_v22 = vpack.c.bf16 %v823_v8, %v819_v16  ;;  %v761_v29 = vadd.f32 %v760_v10, %v2932_v47 }
 0x12d   : > { %v762_v18 = vpop.f32.mrf.mxu1  ;;  %v858_v19 = vpack.c.bf16 %v822_v13, %v818_v11  ;;  %v650_v23 = vadd.f32 %v649_v17, %v2925_v44  ;;  %v825_v43 = vmax.f32 %v648_v28, 0.0 }
 0x12e   : > { %v860_v20 = vpack.c.bf16 %v824_v14, %v820_v12  ;;  %v651_v24 = vpop.f32.mrf.mxu0  ;;  %v763_v26 = vadd.f32 %v762_v18, %v2927_v45  ;;  %v827_v48 = vmax.f32 %v761_v29, 0.0  ;;  %2361 = vmatpush3.bf16.msra.mxu1 %v2591_v54 }
 0x12f   : > { %v764_v25 = vpop.f32.mrf.mxu1  ;;  %v652_v27 = vadd.f32 %v651_v24, %v2930_v46  ;;  %1353 = vmatprep.mubr.bf16.mxu0 %v858_v19  ;;  %v826_v38 = vmax.f32 %v650_v23, 0.0  ;;  %2362 = vmatprep.subr.bf16.mxu1 %v2592_v55 }
 0x130   : > { %v765_v1 = vadd.f32 %v764_v25, %v2932_v47  ;;  %1466 = vmatprep.mubr.bf16.mxu1 %v860_v20  ;;  %v653_v30 = vpop.f32.mrf.mxu0  ;;  %1354 = vmatmul.mubr.bf16.gmra.mxu0 %v857_v21  ;;  %v828_v40 = vmax.f32 %v763_v26, 0.0 }
 0x131   : > { %v766_v31 = vpop.f32.mrf.mxu1  ;;  %1467 = vmatmul.mubr.bf16.gmra.mxu1 %v859_v22  ;;  %v654_v32 = vadd.f32 %v653_v30, %v2925_v44  ;;  %v829_v34 = vmax.f32 %v652_v27, 0.0  ;;  %v2586_v44 = vld [vmem:[%s3230_s5 + $0x48] sm:$0xff]  }
 0x132   : > { %v767_v33 = vadd.f32 %v766_v31, %v2927_v45  ;;  %v831_v35 = vmax.f32 %v765_v1, 0.0  ;;  %v2587_v45 = vld [vmem:[%s3230_s5 + $0x8] sm:$0xff]   ;;  %2281 = vmatprep.subr.bf16.mxu0 %v2586_v44  ;;  %2363 = vmatpush3.bf16.msra.mxu1 %v2592_v55 }
 0x133   : > { %v830_v41 = vmax.f32 %v654_v32, 0.0  ;;  %v861_v50 = vpack.c.bf16 %v829_v34, %v825_v43  ;;  %2282 = vmatpush3.bf16.msra.mxu0 %v2587_v45 }
 0x134   : > { %v832_v42 = vmax.f32 %v767_v33, 0.0  ;;  %v863_v47 = vpack.c.bf16 %v831_v35, %v827_v48  ;;  %2283 = vmatprep.subr.bf16.mxu0 %v2588_v51 }
 0x135   : > { %v862_v49 = vpack.c.bf16 %v830_v41, %v826_v38 }
 0x136   : > { %v864_v46 = vpack.c.bf16 %v832_v42, %v828_v40 }
 0x137   : > { %1363 = vmatprep.mubr.bf16.mxu0 %v862_v49  ;;  %2284 = vmatpush3.bf16.msra.mxu0 %v2589_v52 }
 0x138   : > { %1476 = vmatprep.mubr.bf16.mxu1 %v864_v46  ;;  %1364 = vmatmul.mubr.bf16.gmra.mxu0 %v861_v50 }
 0x139   : > { %1477 = vmatmul.mubr.bf16.gmra.mxu1 %v863_v47 }
 0x1c0   : > { %v1295_v59 = vpop.f32.mrf.mxu0 }
 0x1c1   : > { %v1408_v60 = vpop.f32.mrf.mxu1  ;;  %v1296_v0 = vadd.f32 %v1295_v59, %v3060_v58 }
 0x1c2   : > { %v1297_v61 = vpop.f32.mrf.mxu0 }
 0x1c3   : > { %v1410_v62 = vpop.f32.mrf.mxu1  ;;  %v1298_v63 = vadd.f32 %v1297_v61, %v3057_v57  ;;  %v1409_v8 = vadd.f32 %v1408_v60, %v1296_v0 }
 0x1c4   : > { %v1299_v2 = vpop.f32.mrf.mxu0 }
 0x1c5   : > { %v1412_v3 = vpop.f32.mrf.mxu1  ;;  %v1300_v4 = vadd.f32 %v1299_v2, %v3060_v58  ;;  %v1411_v36 = vadd.f32 %v1410_v62, %v1298_v63  ;;  %v1487_v18 = vmax.f32 %v1409_v8, 0.0 }
 0x1c6   : > { %v1301_v5 = vpop.f32.mrf.mxu0 }
 0x1c7   : > { %v1414_v6 = vpop.f32.mrf.mxu1  ;;  %v1413_v37 = vadd.f32 %v1412_v3, %v1300_v4  ;;  %v1302_v7 = vadd.f32 %v1301_v5, %v3057_v57  ;;  %v1488_v15 = vmax.f32 %v1411_v36, 0.0 }
 0x1c8   : > { %v1305_v9 = vpop.f32.mrf.mxu0 }
 0x1c9   : > { %v1418_v10 = vpop.f32.mrf.mxu1  ;;  %v1415_v11 = vadd.f32 %v1414_v6, %v1302_v7  ;;  %v1489_v12 = vmax.f32 %v1413_v37, 0.0  ;;  %v1306_v19 = vadd.f32 %v1305_v9, %v3060_v58 }
 0x1ca   : > { %v1307_v13 = vpop.f32.mrf.mxu0 }
 0x1cb   : > { %v1420_v14 = vpop.f32.mrf.mxu1  ;;  %v1490_v16 = vmax.f32 %v1415_v11, 0.0  ;;  %v1308_v17 = vadd.f32 %v1307_v13, %v3057_v57  ;;  %v1519_v24 = vpack.c.bf16 %v1489_v12, %v1487_v18  ;;  %v1419_v29 = vadd.f32 %v1418_v10, %v1306_v19 }
 0x1cc   : > { %v1309_v20 = vpop.f32.mrf.mxu0 }
 0x1cd   : > { %v1422_v21 = vpop.f32.mrf.mxu1  ;;  %v1520_v22 = vpack.c.bf16 %v1490_v16, %v1488_v15  ;;  %v1310_v23 = vadd.f32 %v1309_v20, %v3060_v58  ;;  %v1421_v27 = vadd.f32 %v1420_v14, %v1308_v17  ;;  %v1491_v42 = vmax.f32 %v1419_v29, 0.0 }
 0x1ce   : > { %v1311_v25 = vpop.f32.mrf.mxu0 }
 0x1cf   : > { %v1424_v26 = vpop.f32.mrf.mxu1  ;;  %v1423_v1 = vadd.f32 %v1422_v21, %v1310_v23  ;;  %v1312_v28 = vadd.f32 %v1311_v25, %v3057_v57  ;;  %1702 = vmatprep.mubr.bf16.mxu0 %v1520_v22  ;;  %v1492_v38 = vmax.f32 %v1421_v27, 0.0 }
 0x1d0   : > { %v1315_v30 = vpop.f32.mrf.mxu0  ;;  %1703 = vmatmul.mubr.bf16.vlgmr.msra.gmra.mxu0 %v1519_v24 }
 0x1d1   : > { %v1428_v31 = vpop.f32.mrf.mxu1  ;;  %v1425_v32 = vadd.f32 %v1424_v26, %v1312_v28  ;;  %v1493_v33 = vmax.f32 %v1423_v1, 0.0  ;;  %v1316_v43 = vadd.f32 %v1315_v30, %v3060_v58 }
 0x1d2   : > { %v1317_v34 = vpop.f32.mrf.mxu0 }
 0x1d3   : > { %v1430_v35 = vpop.f32.mrf.mxu1  ;;  %v1494_v40 = vmax.f32 %v1425_v32, 0.0  ;;  %v1318_v41 = vadd.f32 %v1317_v34, %v3057_v57  ;;  %v1521_v47 = vpack.c.bf16 %v1493_v33, %v1491_v42  ;;  %v1429_v54 = vadd.f32 %v1428_v31, %v1316_v43 }
 0x1d4   : > { %v1319_v48 = vpop.f32.mrf.mxu0 }
 0x1d5   : > { %v1432_v49 = vpop.f32.mrf.mxu1  ;;  %v1522_v46 = vpack.c.bf16 %v1494_v40, %v1492_v38  ;;  %v1320_v50 = vadd.f32 %v1319_v48, %v3060_v58  ;;  %v1431_v51 = vadd.f32 %v1430_v35, %v1318_v41  ;;  %v1495_v3 = vmax.f32 %v1429_v54, 0.0 }
 0x1d6   : > { %v1321_v44 = vpop.f32.mrf.mxu0 }
 0x1d7   : > { %v1434_v45 = vpop.f32.mrf.mxu1  ;;  %v1433_v52 = vadd.f32 %v1432_v49, %v1320_v50  ;;  %v1322_v53 = vadd.f32 %v1321_v44, %v3057_v57  ;;  %1710 = vmatprep.mubr.bf16.mxu0 %v1522_v46  ;;  %v1496_v63 = vmax.f32 %v1431_v51, 0.0 }
 0x1d8   : > { %v1325_v55 = vpop.f32.mrf.mxu0  ;;  %1711 = vmatmul.mubr.bf16.gmra.mxu0 %v1521_v47 }
 0x1d9   : > { %v1438_v56 = vpop.f32.mrf.mxu1  ;;  %v1435_v59 = vadd.f32 %v1434_v45, %v1322_v53  ;;  %v1497_v60 = vmax.f32 %v1433_v52, 0.0  ;;  %v1326_v4 = vadd.f32 %v1325_v55, %v3060_v58 }
 0x1da   : > { %v1327_v61 = vpop.f32.mrf.mxu0 }
 0x1db   : > { %v1440_v62 = vpop.f32.mrf.mxu1  ;;  %v1498_v0 = vmax.f32 %v1435_v59, 0.0  ;;  %v1328_v2 = vadd.f32 %v1327_v61, %v3057_v57  ;;  %v1523_v7 = vpack.c.bf16 %v1497_v60, %v1495_v3  ;;  %v1439_v13 = vadd.f32 %v1438_v56, %v1326_v4 }
 0x1dc   : > { %v1329_v5 = vpop.f32.mrf.mxu0 }
 0x1dd   : > { %v1442_v6 = vpop.f32.mrf.mxu1  ;;  %v1524_v36 = vpack.c.bf16 %v1498_v0, %v1496_v63  ;;  %v1330_v37 = vadd.f32 %v1329_v5, %v3060_v58  ;;  %v1441_v10 = vadd.f32 %v1440_v62, %v1328_v2  ;;  %v1499_v23 = vmax.f32 %v1439_v13, 0.0 }
 0x1de   : > { %v1331_v8 = vpop.f32.mrf.mxu0 }
 0x1df   : > { %v1444_v9 = vpop.f32.mrf.mxu1  ;;  %v1443_v11 = vadd.f32 %v1442_v6, %v1330_v37  ;;  %v1332_v12 = vadd.f32 %v1331_v8, %v3057_v57  ;;  %1718 = vmatprep.mubr.bf16.mxu0 %v1524_v36  ;;  %v1500_v20 = vmax.f32 %v1441_v10, 0.0 }
 0x1e0   : > { %v1335_v14 = vpop.f32.mrf.mxu0  ;;  %1719 = vmatmul.mubr.bf16.gmra.mxu0 %v1523_v7 }
 0x1e1   : > { %v1448_v15 = vpop.f32.mrf.mxu1  ;;  %v1445_v16 = vadd.f32 %v1444_v9, %v1332_v12  ;;  %v1501_v17 = vmax.f32 %v1443_v11, 0.0  ;;  %v1336_v24 = vadd.f32 %v1335_v14, %v3060_v58 }
 0x1e2   : > { %v1337_v18 = vpop.f32.mrf.mxu0 }
 0x1e3   : > { %v1450_v19 = vpop.f32.mrf.mxu1  ;;  %v1502_v21 = vmax.f32 %v1445_v16, 0.0  ;;  %v1338_v22 = vadd.f32 %v1337_v18, %v3057_v57  ;;  %v1525_v28 = vpack.c.bf16 %v1501_v17, %v1499_v23  ;;  %v1449_v34 = vadd.f32 %v1448_v15, %v1336_v24 }
 0x1e4   : > { %v1339_v25 = vpop.f32.mrf.mxu0 }
 0x1e5   : > { %v1452_v26 = vpop.f32.mrf.mxu1  ;;  %v1526_v27 = vpack.c.bf16 %v1502_v21, %v1500_v20  ;;  %v1340_v1 = vadd.f32 %v1339_v25, %v3060_v58  ;;  %v1451_v31 = vadd.f32 %v1450_v19, %v1338_v22  ;;  %v1503_v50 = vmax.f32 %v1449_v34, 0.0 }
 0x1e6   : > { %v1341_v29 = vpop.f32.mrf.mxu0 }
 0x1e7   : > { %v1454_v30 = vpop.f32.mrf.mxu1  ;;  %v1453_v32 = vadd.f32 %v1452_v26, %v1340_v1  ;;  %v1342_v33 = vadd.f32 %v1341_v29, %v3057_v57  ;;  %1726 = vmatprep.mubr.bf16.mxu0 %v1526_v27  ;;  %v1504_v48 = vmax.f32 %v1451_v31, 0.0 }
 0x1e8   : > { %v1345_v35 = vpop.f32.mrf.mxu0  ;;  %1727 = vmatmul.mubr.bf16.gmra.mxu0 %v1525_v28 }
 0x1e9   : > { %v1458_v38 = vpop.f32.mrf.mxu1  ;;  %v1455_v40 = vadd.f32 %v1454_v30, %v1342_v33  ;;  %v1505_v41 = vmax.f32 %v1453_v32, 0.0  ;;  %v1346_v47 = vadd.f32 %v1345_v35, %v3060_v58 }
 0x1ea   : > { %v1347_v42 = vpop.f32.mrf.mxu0 }
 0x1eb   : > { %v1460_v43 = vpop.f32.mrf.mxu1  ;;  %v1506_v49 = vmax.f32 %v1455_v40, 0.0  ;;  %v1348_v46 = vadd.f32 %v1347_v42, %v3057_v57  ;;  %v1527_v53 = vpack.c.bf16 %v1505_v41, %v1503_v50  ;;  %v1459_v61 = vadd.f32 %v1458_v38, %v1346_v47 }
 0x1ec   : > { %v1349_v44 = vpop.f32.mrf.mxu0 }
 0x1ed   : > { %v1462_v45 = vpop.f32.mrf.mxu1  ;;  %v1528_v51 = vpack.c.bf16 %v1506_v49, %v1504_v48  ;;  %v1350_v52 = vadd.f32 %v1349_v44, %v3060_v58  ;;  %v1461_v56 = vadd.f32 %v1460_v43, %v1348_v46  ;;  %v1507_v37 = vmax.f32 %v1459_v61, 0.0 }
 0x1ee   : > { %v1351_v54 = vpop.f32.mrf.mxu0 }
 0x1ef   : > { %v1464_v55 = vpop.f32.mrf.mxu1  ;;  %v1463_v59 = vadd.f32 %v1462_v45, %v1350_v52  ;;  %v1352_v60 = vadd.f32 %v1351_v54, %v3057_v57  ;;  %1734 = vmatprep.mubr.bf16.mxu0 %v1528_v51  ;;  %v1508_v5 = vmax.f32 %v1461_v56, 0.0  ;;  %v2595_v45 = vld [vmem:[%s3232_s7 + $0x10] sm:$0xff]   ;;  %v2596_v51 = vld [vmem:[%s3232_s7 + $0x8] sm:$0xff]   ;;  %v2597_v52 = vld [vmem:[%s3232_s7] sm:$0xff]  }
 0x1f0   : > { %v1355_v62 = vpop.f32.mrf.mxu0  ;;  %1735 = vmatmul.mubr.bf16.gmra.mxu0 %v1527_v53  ;;  %v3112_v56 = vld [vmem:[%s3231_s6] ss:$0 sm:$0xff] }
 0x1f1   : > { %v1468_v63 = vpop.f32.mrf.mxu1  ;;  %v1465_v0 = vadd.f32 %v1464_v55, %v1352_v60  ;;  %v1509_v2 = vmax.f32 %v1463_v59, 0.0  ;;  %v1356_v7 = vadd.f32 %v1355_v62, %v3060_v58 }
 0x1f2   : > { %v1357_v3 = vpop.f32.mrf.mxu0 }
 0x1f3   : > { %v1470_v4 = vpop.f32.mrf.mxu1  ;;  %v1510_v6 = vmax.f32 %v1465_v0, 0.0  ;;  %v1358_v36 = vadd.f32 %v1357_v3, %v3057_v57  ;;  %v1529_v12 = vpack.c.bf16 %v1509_v2, %v1507_v37  ;;  %v1469_v18 = vadd.f32 %v1468_v63, %v1356_v7 }
 0x1f4   : > { %v1359_v8 = vpop.f32.mrf.mxu0 }
 0x1f5   : > { %v1472_v9 = vpop.f32.mrf.mxu1  ;;  %v1530_v10 = vpack.c.bf16 %v1510_v6, %v1508_v5  ;;  %v1360_v11 = vadd.f32 %v1359_v8, %v3060_v58  ;;  %v1471_v15 = vadd.f32 %v1470_v4, %v1358_v36  ;;  %v1511_v1 = vmax.f32 %v1469_v18, 0.0 }
 0x1f6   : > { %v1361_v13 = vpop.f32.mrf.mxu0 }
 0x1f7   : > { %v1474_v14 = vpop.f32.mrf.mxu1  ;;  %v1473_v16 = vadd.f32 %v1472_v9, %v1360_v11  ;;  %v1362_v17 = vadd.f32 %v1361_v13, %v3057_v57  ;;  %1742 = vmatprep.mubr.bf16.mxu0 %v1530_v10  ;;  %v1512_v25 = vmax.f32 %v1471_v15, 0.0 }
 0x1f8   : > { %v1365_v19 = vpop.f32.mrf.mxu0  ;;  %1743 = vmatmul.mubr.bf16.gmra.mxu0 %v1529_v12 }
 0x1f9   : > { %v1478_v20 = vpop.f32.mrf.mxu1  ;;  %v1475_v21 = vadd.f32 %v1474_v14, %v1362_v17  ;;  %v1513_v22 = vmax.f32 %v1473_v16, 0.0  ;;  %v1366_v28 = vadd.f32 %v1365_v19, %v3060_v58 }
 0x1fa   : > { %v1367_v23 = vpop.f32.mrf.mxu0 }
 0x1fb   : > { %v1480_v24 = vpop.f32.mrf.mxu1  ;;  %v1514_v26 = vmax.f32 %v1475_v21, 0.0  ;;  %v1368_v27 = vadd.f32 %v1367_v23, %v3057_v57  ;;  %v1531_v33 = vpack.c.bf16 %v1513_v22, %v1511_v1  ;;  %v1479_v41 = vadd.f32 %v1478_v20, %v1366_v28 }
 0x1fc   : > { %v1369_v29 = vpop.f32.mrf.mxu0 }
 0x1fd   : > { %v1482_v30 = vpop.f32.mrf.mxu1  ;;  %v1532_v31 = vpack.c.bf16 %v1514_v26, %v1512_v25  ;;  %v1370_v32 = vadd.f32 %v1369_v29, %v3060_v58  ;;  %v1481_v35 = vadd.f32 %v1480_v24, %v1368_v27  ;;  %v1515_v50 = vmax.f32 %v1479_v41, 0.0  ;;  %v2593_v58 = vld [vmem:[%s3232_s7 + $0x20] sm:$0xff]  }
 0x1fe   : > { %v1371_v34 = vpop.f32.mrf.mxu0  ;;  %2364 = vmatprep.subr.bf16.mxu1 %v2593_v58 }
 0x1ff   : > { %v1483_v38 = vadd.f32 %v1482_v30, %v1370_v32  ;;  %v1372_v40 = vadd.f32 %v1371_v34, %v3057_v57  ;;  %1750 = vmatprep.mubr.bf16.mxu0 %v1532_v31  ;;  %v1484_v42 = vpop.f32.mrf.mxu1  ;;  %v1516_v49 = vmax.f32 %v1481_v35, 0.0  ;;  %2365 = vmatpush3.bf16.msra.mxu1 %v2593_v58  ;;  %v2594_v57 = vld [vmem:[%s3232_s7 + $0x18] sm:$0xff]  }
 0x200   : > { %1751 = vmatmul.mubr.bf16.gmra.mxu0 %v1531_v33  ;;  %2366 = vmatprep.subr.bf16.mxu1 %v2594_v57 }
 0x201   : > { %v1485_v43 = vadd.f32 %v1484_v42, %v1372_v40  ;;  %v1517_v48 = vmax.f32 %v1483_v38, 0.0 }
 0x203   : > { %v1518_v46 = vmax.f32 %v1485_v43, 0.0  ;;  %v1533_v44 = vpack.c.bf16 %v1517_v48, %v1515_v50  ;;  %2367 = vmatpush3.bf16.msra.mxu1 %v2594_v57 }
 0x204   : > { %2368 = vmatprep.subr.bf16.mxu1 %v2595_v45 }
 0x205   : > { %v1534_v47 = vpack.c.bf16 %v1518_v46, %v1516_v49 }
 0x207   : > { %1758 = vmatprep.mubr.bf16.mxu0 %v1534_v47  ;;  %2369 = vmatpush3.bf16.msra.mxu1 %v2595_v45 }
 0x208   : > { %1759 = vmatmul.mubr.bf16.gmra.mxu0 %v1533_v44  ;;  %2370 = vmatprep.subr.bf16.mxu1 %v2596_v51 }
 0x20b   : > { %2371 = vmatpush3.bf16.msra.mxu1 %v2596_v51 }
 0x20c   : > { %2372 = vmatprep.subr.bf16.mxu1 %v2597_v52 }
 0x20f   : > { %2373 = vmatpush3.bf16.msra.mxu1 %v2597_v52 }
 0x290   : > { %v2285_v53 = vpop.f32.mrf.mxu0 }
 0x292   : > { %v2286_v54 = vpop.f32.mrf.mxu0 }
 0x293   : > { %v2287_v55 = vadd.f32 %v2286_v54, %v2285_v53 }
 0x294   : > { %v2288_v59 = vpop.f32.mrf.mxu0 }
 0x295   : > { %v1705_v61 = vadd.f32 %v2287_v55, %v3112_v56 }
 0x296   : > { %v2289_v60 = vpop.f32.mrf.mxu0 }
 0x297   : > { %v2290_v62 = vadd.f32 %v2289_v60, %v2288_v59  ;;  %v1767_v3 = vmax.f32 %v1705_v61, 0.0 }
 0x298   : > { %v2291_v63 = vpop.f32.mrf.mxu0 }
 0x299   : > { %v1708_v0 = vadd.f32 %v2290_v62, %v3112_v56 }
 0x29a   : > { %v2292_v2 = vpop.f32.mrf.mxu0 }
 0x29b   : > { %v1768_v4 = vmax.f32 %v1708_v0, 0.0  ;;  %v2293_v5 = vadd.f32 %v2292_v2, %v2291_v63 }
 0x29c   : > { %v2294_v6 = vpop.f32.mrf.mxu0 }
 0x29d   : > { %v1783_v36 = vpack.c.bf16 %v1768_v4, %v1767_v3  ;;  %v1713_v7 = vadd.f32 %v2293_v5, %v3112_v56 }
 0x29e   : > { %v2295_v37 = vpop.f32.mrf.mxu0 }
 0x29f   : > { %v2296_v8 = vadd.f32 %v2295_v37, %v2294_v6  ;;  %2374 = vmatprep.mubr.bf16.mxu1 %v1783_v36  ;;  %v1769_v12 = vmax.f32 %v1713_v7, 0.0 }
 0x2a0   : > { %v2297_v9 = vpop.f32.mrf.mxu0 }
 0x2a1   : > { %v1716_v10 = vadd.f32 %v2296_v8, %v3112_v56 }
 0x2a2   : > { %v2298_v11 = vpop.f32.mrf.mxu0 }
 0x2a3   : > { %v1770_v13 = vmax.f32 %v1716_v10, 0.0  ;;  %v2299_v14 = vadd.f32 %v2298_v11, %v2297_v9 }
 0x2a4   : > { %v2300_v15 = vpop.f32.mrf.mxu0 }
 0x2a5   : > { %v1784_v16 = vpack.c.bf16 %v1770_v13, %v1769_v12  ;;  %v1721_v18 = vadd.f32 %v2299_v14, %v3112_v56 }
 0x2a6   : > { %v2301_v17 = vpop.f32.mrf.mxu0 }
 0x2a7   : > { %v2302_v19 = vadd.f32 %v2301_v17, %v2300_v15  ;;  %2375 = vmatmul.mubr.bf16.vlgmr.msra.gmra.mxu1 %v1784_v16  ;;  %v1771_v23 = vmax.f32 %v1721_v18, 0.0  ;;  %v2694_v17 = vmov 0.0   ;;  %v1984_v18 = vld [vmem:[#allocation2] sm:$0x1] }
 0x2a8   : > { %v2303_v20 = vpop.f32.mrf.mxu0  ;;  %2390 = vmatprep.subr.bf16.mxu0 %v2694_v17  ;;  %2406 = vmatprep.mubr.msk.bf16.mxu0 %vm2695_vm1, %v2694_v17 }
 0x2a9   : > { %v1724_v21 = vadd.f32 %v2302_v19, %v3112_v56  ;;  %1987 = vperm.xlu0 %2465, %v1984_v18  }
 0x2aa   : > { %v2304_v22 = vpop.f32.mrf.mxu0 }
 0x2ab   : > { %v1772_v24 = vmax.f32 %v1724_v21, 0.0  ;;  %v2305_v25 = vadd.f32 %v2304_v22, %v2303_v20  ;;  %v3135_v20 = vld [vmem:[%s3233_s8] ss:$0 sm:$0xff] }
 0x2ac   : > { %v2306_v26 = vpop.f32.mrf.mxu0 }
 0x2ad   : > { %v1785_v27 = vpack.c.bf16 %v1772_v24, %v1771_v23  ;;  %v1729_v28 = vadd.f32 %v2305_v25, %v3112_v56 }
 0x2ae   : > { %v2307_v1 = vpop.f32.mrf.mxu0 }
 0x2af   : > { %v2308_v29 = vadd.f32 %v2307_v1, %v2306_v26  ;;  %2378 = vmatprep.mubr.bf16.mxu1 %v1785_v27  ;;  %v1773_v33 = vmax.f32 %v1729_v28, 0.0 }
 0x2b0   : > { %v2309_v30 = vpop.f32.mrf.mxu0 }
 0x2b1   : > { %v1732_v31 = vadd.f32 %v2308_v29, %v3112_v56 }
 0x2b2   : > { %v2310_v32 = vpop.f32.mrf.mxu0 }
 0x2b3   : > { %v1774_v34 = vmax.f32 %v1732_v31, 0.0  ;;  %v2311_v35 = vadd.f32 %v2310_v32, %v2309_v30 }
 0x2b4   : > { %v2312_v38 = vpop.f32.mrf.mxu0 }
 0x2b5   : > { %v1786_v40 = vpack.c.bf16 %v1774_v34, %v1773_v33  ;;  %v1737_v42 = vadd.f32 %v2311_v35, %v3112_v56 }
 0x2b6   : > { %v2313_v41 = vpop.f32.mrf.mxu0 }
 0x2b7   : > { %v2314_v43 = vadd.f32 %v2313_v41, %v2312_v38  ;;  %2379 = vmatmul.mubr.bf16.gmra.mxu1 %v1786_v40  ;;  %v1775_v50 = vmax.f32 %v1737_v42, 0.0 }
 0x2b8   : > { %v2315_v48 = vpop.f32.mrf.mxu0 }
 0x2b9   : > { %v1740_v49 = vadd.f32 %v2314_v43, %v3112_v56 }
 0x2ba   : > { %v2316_v46 = vpop.f32.mrf.mxu0 }
 0x2bb   : > { %v1776_v47 = vmax.f32 %v1740_v49, 0.0  ;;  %v2317_v44 = vadd.f32 %v2316_v46, %v2315_v48 }
 0x2bc   : > { %v2318_v58 = vpop.f32.mrf.mxu0 }
 0x2bd   : > { %v1787_v57 = vpack.c.bf16 %v1776_v47, %v1775_v50  ;;  %v1745_v51 = vadd.f32 %v2317_v44, %v3112_v56 }
 0x2be   : > { %v2319_v45 = vpop.f32.mrf.mxu0 }
 0x2bf   : > { %v2320_v52 = vadd.f32 %v2319_v45, %v2318_v58  ;;  %2382 = vmatprep.mubr.bf16.mxu1 %v1787_v57  ;;  %v1777_v59 = vmax.f32 %v1745_v51, 0.0 }
 0x2c0   : > { %v2321_v53 = vpop.f32.mrf.mxu0 }
 0x2c1   : > { %v1748_v54 = vadd.f32 %v2320_v52, %v3112_v56 }
 0x2c2   : > { %v2322_v55 = vpop.f32.mrf.mxu0 }
 0x2c3   : > { %v1778_v60 = vmax.f32 %v1748_v54, 0.0  ;;  %v2323_v61 = vadd.f32 %v2322_v55, %v2321_v53 }
 0x2c4   : > { %v2324_v62 = vpop.f32.mrf.mxu0 }
 0x2c5   : > { %v1788_v63 = vpack.c.bf16 %v1778_v60, %v1777_v59  ;;  %v1753_v2 = vadd.f32 %v2323_v61, %v3112_v56 }
 0x2c6   : > { %v2325_v0 = vpop.f32.mrf.mxu0 }
 0x2c7   : > { %v2326_v3 = vadd.f32 %v2325_v0, %v2324_v62  ;;  %2383 = vmatmul.mubr.bf16.gmra.mxu1 %v1788_v63  ;;  %v1779_v36 = vmax.f32 %v1753_v2, 0.0 }
 0x2c8   : > { %v2327_v4 = vpop.f32.mrf.mxu0 }
 0x2c9   : > { %v1756_v5 = vadd.f32 %v2326_v3, %v3112_v56 }
 0x2ca   : > { %v2328_v6 = vpop.f32.mrf.mxu0 }
 0x2cb   : > { %v1780_v37 = vmax.f32 %v1756_v5, 0.0  ;;  %v2329_v7 = vadd.f32 %v2328_v6, %v2327_v4 }
 0x2cc   : > { %v2330_v8 = vpop.f32.mrf.mxu0 }
 0x2cd   : > { %v1789_v9 = vpack.c.bf16 %v1780_v37, %v1779_v36  ;;  %v1761_v11 = vadd.f32 %v2329_v7, %v3112_v56 }
 0x2ce   : > { %v2331_v10 = vpop.f32.mrf.mxu0 }
 0x2cf   : > { %v2332_v12 = vadd.f32 %v2331_v10, %v2330_v8  ;;  %2386 = vmatprep.mubr.bf16.mxu1 %v1789_v9  ;;  %v1781_v14 = vmax.f32 %v1761_v11, 0.0 }
 0x2d1   : > { %v1764_v13 = vadd.f32 %v2332_v12, %v3112_v56 }
 0x2d3   : > { %v1782_v15 = vmax.f32 %v1764_v13, 0.0 }
 0x2d5   : > { %v1790_v16 = vpack.c.bf16 %v1782_v15, %v1781_v14 }
 0x2d7   : > { %2387 = vmatmul.mubr.bf16.gmra.mxu1 %v1790_v16 }
 0x367   : > { %v2376_v19 = vpop.f32.mrf.mxu1 }
 0x368   : > { %v1905_v56 = vadd.f32 %v2376_v19, %v3135_v20 }
 0x369   : > { %v1896_v21 = vpop.f32.mrf.mxu1 }
 0x36a   : > { %v1897_v23 = vadd.f32 %v3135_v20, %v1896_v21  ;;  %v1961_v26 = vmax.f32 %v1905_v56, 0.0  ;;  %v1983_v56 = vld [vmem:[%s3234_s9] sm:$0x1] }
 0x36b   : > { %v2377_v22 = vpop.f32.mrf.mxu1 }
 0x36c   : > { %v1908_v24 = vadd.f32 %v2377_v22, %v3135_v20  ;;  %v1959_v28 = vmax.f32 %v1897_v23, 0.0  ;;  %v1988_v22 = vpop.permute.xlu0 %1987 }
 0x36d   : > { %v1899_v25 = vpop.f32.mrf.mxu1  ;;  %v1993_v23 = vrot.slane %v1988_v22, %v2917_v39 }
 0x36e   : > { %v1962_v27 = vmax.f32 %v1908_v24, 0.0  ;;  %v1900_v1 = vadd.f32 %v3135_v20, %v1899_v25 }
 0x370   : > { %v3141_v29 = vpack.c.bf16 %v1962_v27, %v1961_v26  ;;  %v1960_v30 = vmax.f32 %v1900_v1, 0.0 }
 0x372   : > { %v3143_v31 = vpack.c.bf16 %v1960_v30, %v1959_v28  ;;  %v2002_v21 = vsel %vm1994_vm2, %v3141_v29, 0 }
 0x377   : > { %v2380_v32 = vpop.f32.mrf.mxu1 }
 0x378   : > { %v1921_v7 = vadd.f32 %v2380_v32, %v3135_v20 }
 0x379   : > { %v1912_v33 = vpop.f32.mrf.mxu1 }
 0x37a   : > { %v1965_v10 = vmax.f32 %v1921_v7, 0.0  ;;  %v1913_v13 = vadd.f32 %v3135_v20, %v1912_v33 }
 0x37b   : > { %v2381_v34 = vpop.f32.mrf.mxu1 }
 0x37c   : > { %v1924_v36 = vadd.f32 %v2381_v34, %v3135_v20  ;;  %v1963_v16 = vmax.f32 %v1913_v13, 0.0 }
 0x37d   : > { %v1915_v35 = vpop.f32.mrf.mxu1 }
 0x37e   : > { %v1966_v8 = vmax.f32 %v1924_v36, 0.0  ;;  %v1916_v12 = vadd.f32 %v3135_v20, %v1915_v35 }
 0x380   : > { %v1978_v11 = vpack.c.bf16 %v1966_v8, %v1965_v10  ;;  %v1964_v14 = vmax.f32 %v1916_v12, 0.0 }
 0x382   : > { %v2008_v15 = vsel %vm1994_vm2, %v1978_v11, 0  ;;  %v1977_v18 = vpack.c.bf16 %v1964_v14, %v1963_v16 }
 0x384   : > { %v2005_v19 = vsel %vm1994_vm2, %v1977_v18, 0 }
 0x387   : > { %v2384_v38 = vpop.f32.mrf.mxu1 }
 0x388   : > { %v1937_v60 = vadd.f32 %v2384_v38, %v3135_v20 }
 0x389   : > { %v1928_v40 = vpop.f32.mrf.mxu1 }
 0x38a   : > { %v1969_v63 = vmax.f32 %v1937_v60, 0.0  ;;  %v1929_v3 = vadd.f32 %v3135_v20, %v1928_v40 }
 0x38b   : > { %v2385_v41 = vpop.f32.mrf.mxu1 }
 0x38c   : > { %v1940_v55 = vadd.f32 %v2385_v41, %v3135_v20  ;;  %v1967_v6 = vmax.f32 %v1929_v3, 0.0 }
 0x38d   : > { %v1931_v42 = vpop.f32.mrf.mxu1 }
 0x38e   : > { %v1970_v61 = vmax.f32 %v1940_v55, 0.0  ;;  %v1932_v2 = vadd.f32 %v3135_v20, %v1931_v42 }
 0x390   : > { %v1980_v0 = vpack.c.bf16 %v1970_v61, %v1969_v63  ;;  %v1968_v4 = vmax.f32 %v1932_v2, 0.0 }
 0x392   : > { %v2014_v5 = vsel %vm1994_vm2, %v1980_v0, 0  ;;  %v1979_v37 = vpack.c.bf16 %v1968_v4, %v1967_v6 }
 0x394   : > { %v2011_v9 = vsel %vm1994_vm2, %v1979_v37, 0 }
 0x397   : > { %v2388_v43 = vpop.f32.mrf.mxu1 }
 0x398   : > { %v1953_v49 = vadd.f32 %v2388_v43, %v3135_v20 }
 0x399   : > { %v1944_v48 = vpop.f32.mrf.mxu1 }
 0x39a   : > { %v1973_v44 = vmax.f32 %v1953_v49, 0.0  ;;  %v1945_v45 = vadd.f32 %v3135_v20, %v1944_v48 }
 0x39b   : > { %v2389_v46 = vpop.f32.mrf.mxu1 }
 0x39c   : > { %v1956_v50 = vadd.f32 %v2389_v46, %v3135_v20  ;;  %v1971_v54 = vmax.f32 %v1945_v45, 0.0 }
 0x39d   : > { %v1947_v47 = vpop.f32.mrf.mxu1 }
 0x39e   : > { %v1974_v58 = vmax.f32 %v1956_v50, 0.0  ;;  %v1948_v57 = vadd.f32 %v3135_v20, %v1947_v47  ;;  %v1999_v20 = vsel %vm1994_vm2, %v3143_v31, 0 }
 0x3a0   : > { %v1982_v51 = vpack.c.bf16 %v1974_v58, %v1973_v44  ;;  %v1972_v52 = vmax.f32 %v1948_v57, 0.0 }
 0x3a2   : > { %v2020_v53 = vsel %vm1994_vm2, %v1982_v51, 0  ;;  %v1981_v59 = vpack.c.bf16 %v1972_v52, %v1971_v54 }
 0x3a3   : > { %2391 = vmatpush3.bf16.xpose.msra.mxu0 %v2020_v53 }
 0x3a4   : > { %2392 = vmatprep.subr.bf16.mxu0 %v2694_v17  ;;  %v2017_v62 = vsel %vm1994_vm2, %v1981_v59, 0 }
 0x3ab   : > { %2393 = vmatpush3.bf16.xpose.msra.mxu0 %v2017_v62 }
 0x3ac   : > { %2394 = vmatprep.subr.bf16.mxu0 %v2694_v17 }
 0x3b3   : > { %2395 = vmatpush3.bf16.xpose.msra.mxu0 %v2014_v5 }
 0x3b4   : > { %2396 = vmatprep.subr.bf16.mxu0 %v2694_v17 }
 0x3bb   : > { %2397 = vmatpush3.bf16.xpose.msra.mxu0 %v2011_v9 }
 0x3bc   : > { %2398 = vmatprep.subr.bf16.mxu0 %v2694_v17 }
 0x3c3   : > { %2399 = vmatpush3.bf16.xpose.msra.mxu0 %v2008_v15 }
 0x3c4   : > { %2400 = vmatprep.subr.bf16.mxu0 %v2694_v17 }
 0x3cb   : > { %2401 = vmatpush3.bf16.xpose.msra.mxu0 %v2005_v19 }
 0x3cc   : > { %2402 = vmatprep.subr.bf16.mxu0 %v2694_v17 }
 0x3d3   : > { %2403 = vmatpush3.bf16.xpose.msra.mxu0 %v2002_v21 }
 0x3d4   : > { %2404 = vmatprep.subr.bf16.mxu0 %v2694_v17 }
 0x3db   : > { %2405 = vmatpush3.bf16.xpose.msra.mxu0 %v1999_v20 }
 0x3e2   : > { %2407 = vmatmul.mubr.msk.bf16.vlgmr.msra.gmra.mxu0 %vm1994_vm2, %v1983_v56 }
 0x4a2   : > { %v2056_v24 = vpop.f32.mrf.mxu0 }
 0x4a3   : > { %v2057_v25 = vadd.f32 %v2056_v24, %v1993_v23 }
 0x4a4   : > { %v2408_v17 = vpop.f32.mrf.mxu0 }
 0x4a5   : > { %2062 = vst [vmem:[%s408_s26] sm:$0x1] %v2057_v25 }
 0x4a6   : > { %v2059_v26 = vpop.f32.mrf.mxu0 }
 0x4a7   : > { %2637 = shalt.err (!%p2634_p0)
}
 0x4a8   : > { %s2638_s23 = scalar_lea.hbm %s3184_s25, 16  ;;  %s2642_s26 = scalar_lea.hbm %s3236_s11, 32 }
 0x4a9   : > { %p2639_p1 = scmp.ne.s32.totalorder %s3184_s25, %s2638_s23  ;;  %p2643_p4 = scmp.lt.s32.totalorder %s3184_s25, %s3236_s11 }
 0x4aa   : > { %p2644_p7 = scmp.lt.s32.totalorder %s2642_s26, %s2638_s23 }
 0x4ab   : > { %p2640_p2 = pnand %p2639_p1, %p2798_p5 }
 0x4ac   : > { %p2645_p6 = por %p2644_p7, %p2643_p4 }
 0x4ad   : > { %p2641_p3 = pneg %p2640_p2 }
 0x4af   : > { %p2646_p8 = pnand %p2645_p6, %p2641_p3 }
 0x4b1   : > { %2649 = shalt.err (!%p2646_p8)
}
 0x4b2   : > { %2414 = dma.vmem_to_hbm [thread:$0]  (%p2798_p5), %s3186_s16, 16, %s3184_s25, %s2064_s30   ;;  %v2409_v39 = vpop.f32.mrf.mxu0 }
 0x4b3 PF: > { %p2426_p9 = scmp.ge.s32.totalorder %s2688_s22, 2  ;;  %s2088_s12 = sand.u32 1, %s2676_s19  }
 0x4b4   : > { %p3242_p10 = scmp.ne.s32.totalorder %s3239_s29, 0  ;;  %s2089_s13 = scalar_lea.sflag [#allocation5], %s2088_s12 }
 0x4b6   : > { %p2421_p11 = pnand %p2426_p9, %p3242_p10 }
 0x4b8   : > { %p2422_p12 = pneg %p2421_p11 }
 0x4ba   : > { %2671 = dma.done.wait (%p2422_p12), %s2089_s13, 16  }
 0x4bb   : > { %2673 = vsyncadd (%p2422_p12), %s2089_s13, 4294967280  ;;  %p24_p13 = scmp.ge.s32.totalorder %s2785_s24, 4   ;;  %s3243_s19 = smov %s2680_s20 }
 0x4bc   : > { %s3244_s20 = smov %s2684_s21  ;;  %s3245_s21 = smov %s2796_s27 }
 0x4bd   : > { %s3246_s22 = smov %s2785_s24  ;;  %26 = sbr.rel (!%p24_p13) target bundleno = 7 (0x7), region = 104 }
 0x4c2   :  { %2093 = vsyncpa [#allocation4], 1 }
 0x4c3   :  { %2095 = vsyncpa [#allocation4 + $0x1], 1 }
 0x4c4   :  { %2096 = vsyncpa [#allocation5], 1 }
 0x4c5   :  { %2098 = vsyncpa [#allocation5 + $0x1], 1 }

</bundles_post_ra>
